<compile_context>
chip_gen: v7x
topology: tpu7x:2x2x1
jax: 0.10.0
libtpu: 0.0.40
codegen_flags: <defaults>
</compile_context>

<pallas_src>
import functools
import numpy as np
import jax
import jax.numpy as jnp
from jax.experimental import pallas as pl
from jax.experimental.pallas import tpu as pltpu

_VMEM = pl.BlockSpec(memory_space=pltpu.MemorySpace.VMEM)


# ----------------------------- Pallas kernels -----------------------------


def _linear_kernel(x_ref, w_ref, b_ref, o_ref):
    o_ref[...] = (jnp.dot(x_ref[...], w_ref[...],
                          preferred_element_type=jnp.float32) + b_ref[...])


def linear(x, w_t, b):
    """x: (M, K), w_t: (K, N) (= PyTorch weight.T), b: (N,). Returns (M, N)."""
    M, K = x.shape
    N = w_t.shape[1]
    # TODO(synk): tile the N dimension with a grid when N grows to realistic
    # vocab sizes; only small fused input projections go through this helper.
    return pl.pallas_call(
        _linear_kernel,
        out_shape=jax.ShapeDtypeStruct((M, N), jnp.float32),
        in_specs=[_VMEM, _VMEM, _VMEM],
        out_specs=_VMEM,
    )(x, w_t, b.reshape(1, N))


def _bilstm_kernel(xp_ref, whh_ref, hT_ref, *, T, H):
    """One direction of the bidirectional encoder per grid step (grid=(2,)).

    xp_ref  : (T, B, 4H)  precomputed x @ W_ih + (b_ih + b_hh) for this direction
    whh_ref : (H, 4H)     hidden->gate weights (gate order i, f, g, o)
    hT_ref  : (B, H)      final hidden state of this direction
    Direction d == 1 walks time in reverse (PyTorch bidirectional semantics).
    """
    d = pl.program_id(0)
    B = hT_ref.shape[0]
    whh = whh_ref[...]

    def step(t, carry):
        h, c = carry
        idx = jnp.where(d == 0, t, T - 1 - t)
        pre = xp_ref[idx] + jnp.dot(h, whh, preferred_element_type=jnp.float32)
        i = jax.nn.sigmoid(pre[:, 0 * H:1 * H])
        f = jax.nn.sigmoid(pre[:, 1 * H:2 * H])
        g = jnp.tanh(pre[:, 2 * H:3 * H])
        o = jax.nn.sigmoid(pre[:, 3 * H:4 * H])
        c = f * c + i * g
        h = o * jnp.tanh(c)
        return h, c

    h0 = jnp.zeros((B, H), jnp.float32)
    c0 = jnp.zeros((B, H), jnp.float32)
    hT, _ = jax.lax.fori_loop(0, T, step, (h0, c0), unroll=True)
    hT_ref[...] = hT


def bilstm_encode(xp_fwd, xp_bwd, whh_fwd, whh_bwd):
    """Returns final hidden states (2, B, H): [forward, backward]."""
    T, B, G = xp_fwd.shape
    H = G // 4
    xp = jnp.stack([xp_fwd, xp_bwd], axis=0)        # (2, T, B, 4H)
    whh = jnp.stack([whh_fwd, whh_bwd], axis=0)     # (2, H, 4H)
    return pl.pallas_call(
        functools.partial(_bilstm_kernel, T=T, H=H),
        out_shape=jax.ShapeDtypeStruct((2, B, H), jnp.float32),
        grid_spec=pltpu.PrefetchScalarGridSpec(
            num_scalar_prefetch=0,
            grid=(2,),
            in_specs=[
                pl.BlockSpec((None, T, B, G), lambda d: (d, 0, 0, 0)),
                pl.BlockSpec((None, H, G), lambda d: (d, 0, 0)),
            ],
            out_specs=pl.BlockSpec((None, B, H), lambda d: (d, 0, 0)),
        ),
        compiler_params=pltpu.CompilerParams(
            dimension_semantics=("parallel",)),   # 2 TensorCores on v7x
    )(xp, whh)


def _latent_kernel(hT_ref, w_mulv_ref, b_mulv_ref, eps_ref,
                   w_z2emb_ref, b_z2emb_ref, wih_g_ref,
                   mu_ref, logvar_ref, z_ref, zproj_ref, *, Z):
    """Fused: concat(h_fwd,h_bwd) -> [mu|logvar] -> reparameterize -> z2emb ->
    (z2emb @ W_ih_G) so the decoder only needs a per-batch (B,4H) add."""
    h = jnp.concatenate([hT_ref[0], hT_ref[1]], axis=-1)          # (B, 2H)
    mulv = (jnp.dot(h, w_mulv_ref[...], preferred_element_type=jnp.float32)
            + b_mulv_ref[...])                                    # (B, 2Z)
    mu = mulv[:, :Z]
    logvar = mulv[:, Z:]
    z = mu + eps_ref[...] * jnp.exp(0.5 * logvar)
    zemb = (jnp.dot(z, w_z2emb_ref[...], preferred_element_type=jnp.float32)
            + b_z2emb_ref[...])                                   # (B, E)
    zproj = jnp.dot(zemb, wih_g_ref[...],
                    preferred_element_type=jnp.float32)           # (B, 4H)
    mu_ref[...] = mu
    logvar_ref[...] = logvar
    z_ref[...] = z
    zproj_ref[...] = zproj


def latent_forward(hT, w_mulv, b_mulv, eps, w_z2emb, b_z2emb, wih_g):
    B = hT.shape[1]
    Z = eps.shape[1]
    G = wih_g.shape[1]
    return pl.pallas_call(
        functools.partial(_latent_kernel, Z=Z),
        out_shape=(jax.ShapeDtypeStruct((B, Z), jnp.float32),
                   jax.ShapeDtypeStruct((B, Z), jnp.float32),
                   jax.ShapeDtypeStruct((B, Z), jnp.float32),
                   jax.ShapeDtypeStruct((B, G), jnp.float32)),
        in_specs=[_VMEM] * 7,
        out_specs=(_VMEM, _VMEM, _VMEM, _VMEM),
    )(hT, w_mulv, b_mulv.reshape(1, -1), eps,
      w_z2emb, b_z2emb.reshape(1, -1), wih_g)


def _decoder_kernel(xp_ref, zproj_ref, whh_ref, wproj_ref, bproj_ref,
                    logits_ref, *, T, H):
    """Decoder LSTM with the vocab projection fused into each timestep.

    xp_ref    : (T, B, 4H)  emb @ W_ih_G + (b_ih + b_hh)
    zproj_ref : (B, 4H)     z2emb(z) @ W_ih_G  (shared across timesteps)
    whh_ref   : (H, 4H)
    wproj_ref : (H, V), bproj_ref : (1, V)
    logits_ref: (T, B, V)
    """
    B = zproj_ref.shape[0]
    whh = whh_ref[...]
    wproj = wproj_ref[...]
    bproj = bproj_ref[...]
    zproj = zproj_ref[...]

    def step(t, carry):
        h, c = carry
        pre = (xp_ref[t] + zproj
               + jnp.dot(h, whh, preferred_element_type=jnp.float32))
        i = jax.nn.sigmoid(pre[:, 0 * H:1 * H])
        f = jax.nn.sigmoid(pre[:, 1 * H:2 * H])
        g = jnp.tanh(pre[:, 2 * H:3 * H])
        o = jax.nn.sigmoid(pre[:, 3 * H:4 * H])
        c = f * c + i * g
        h = o * jnp.tanh(c)
        logits_ref[t] = (jnp.dot(h, wproj, preferred_element_type=jnp.float32)
                         + bproj)
        return h, c

    h0 = jnp.zeros((B, H), jnp.float32)
    c0 = jnp.zeros((B, H), jnp.float32)
    jax.lax.fori_loop(0, T, step, (h0, c0), unroll=True)


def decoder_forward(xp_g, zproj, whh_g, w_proj_t, b_proj):
    T, B, G = xp_g.shape
    H = G // 4
    V = w_proj_t.shape[1]
    # TODO(synk): for realistic vocab sizes (30k+) tile V against VMEM
    # (grid over vocab columns) instead of keeping (H,V) + (T,B,V) resident.
    return pl.pallas_call(
        functools.partial(_decoder_kernel, T=T, H=H),
        out_shape=jax.ShapeDtypeStruct((T, B, V), jnp.float32),
        in_specs=[_VMEM] * 5,
        out_specs=_VMEM,
    )(xp_g, zproj, whh_g, w_proj_t, b_proj.reshape(1, V))


# ----------------------------- parameter setup -----------------------------


def _uniform(key, shape, a):
    return jax.random.uniform(key, shape, jnp.float32, minval=-a, maxval=a)


def make_lstm_params(key, input_size, hidden_size):
    """PyTorch nn.LSTM default init: U(-1/sqrt(H), 1/sqrt(H)).

    Stored gate-concatenated (PyTorch gate order i,f,g,o along the last dim):
      wih_t: (E, 4H), whh_t: (H, 4H), b: (4H,)  (= b_ih + b_hh)
    """
    stdv = 1.0 / np.sqrt(hidden_size)
    k1, k2, k3, k4 = jax.random.split(key, 4)
    w_ih = _uniform(k1, (4 * hidden_size, input_size), stdv)
    w_hh = _uniform(k2, (4 * hidden_size, hidden_size), stdv)
    b_ih = _uniform(k3, (4 * hidden_size,), stdv)
    b_hh = _uniform(k4, (4 * hidden_size,), stdv)
    return dict(wih_t=w_ih.T, whh_t=w_hh.T, b=b_ih + b_hh)


def make_linear_params(key, in_features, out_features, initrange=None,
                       zero_bias=False):
    k1, k2 = jax.random.split(key)
    bound = initrange if initrange is not None else 1.0 / np.sqrt(in_features)
    w = _uniform(k1, (out_features, in_features), bound)
    b = (jnp.zeros((out_features,), jnp.float32) if zero_bias
         else _uniform(k2, (out_features,), 1.0 / np.sqrt(in_features)))
    return dict(w_t=w.T, b=b)  # store transposed for the kernels


def make_dae_params(key, vocab_size, dim_emb, dim_h, dim_z, initrange=0.1):
    ks = jax.random.split(key, 8)
    return dict(
        embed=_uniform(ks[0], (vocab_size, dim_emb), initrange),
        E_fwd=make_lstm_params(ks[1], dim_emb, dim_h),
        E_bwd=make_lstm_params(ks[2], dim_emb, dim_h),
        G=make_lstm_params(ks[3], dim_emb, dim_h),
        h2mu=make_linear_params(ks[4], 2 * dim_h, dim_z),
        h2logvar=make_linear_params(ks[5], 2 * dim_h, dim_z),
        z2emb=make_linear_params(ks[6], dim_z, dim_emb),
        proj=make_linear_params(ks[7], dim_h, vocab_size,
                                initrange=initrange, zero_bias=True),
    )


# ----------------------------- DAE forward -----------------------------


@jax.jit
def dae_forward(params, input_ids, eps_key):
    """input_ids: (T, B) int32.  Returns (mu, logvar, z, logits)."""
    T, B = input_ids.shape
    E = params["embed"].shape[1]
    H = params["E_fwd"]["whh_t"].shape[0]
    G = 4 * H

    # Embedding lookup (gather) is glue in plain JAX (dropout = identity at eval).
    emb = jnp.take(params["embed"], input_ids, axis=0)             # (T, B, E)
    emb_flat = emb.reshape(T * B, E)

    # Hoist all three input projections (E_fwd / E_bwd / G) out of the
    # recurrences with one fused matmul; biases folded in here.
    wih_all = jnp.concatenate([params["E_fwd"]["wih_t"],
                               params["E_bwd"]["wih_t"],
                               params["G"]["wih_t"]], axis=1)      # (E, 12H)
    b_all = jnp.concatenate([params["E_fwd"]["b"],
                             params["E_bwd"]["b"],
                             params["G"]["b"]])                    # (12H,)
    xp_all = linear(emb_flat, wih_all, b_all)                      # (T*B, 12H)
    xp_fwd = xp_all[:, 0 * G:1 * G].reshape(T, B, G)
    xp_bwd = xp_all[:, 1 * G:2 * G].reshape(T, B, G)
    xp_g = xp_all[:, 2 * G:3 * G].reshape(T, B, G)

    # --- encode: bidirectional LSTM, both directions in one kernel;
    #             backward direction walks time in reverse in-kernel ---
    hT = bilstm_encode(xp_fwd, xp_bwd,
                       params["E_fwd"]["whh_t"], params["E_bwd"]["whh_t"])

    # --- latent: fused h2mu/h2logvar + reparameterize + z2emb + (.)@W_ih_G ---
    w_mulv = jnp.concatenate([params["h2mu"]["w_t"],
                              params["h2logvar"]["w_t"]], axis=1)  # (2H, 2Z)
    b_mulv = jnp.concatenate([params["h2mu"]["b"],
                              params["h2logvar"]["b"]])            # (2Z,)
    Z = params["h2mu"]["w_t"].shape[1]
    eps = jax.random.normal(eps_key, (B, Z), jnp.float32)
    mu, logvar, z, zproj = latent_forward(
        hT, w_mulv, b_mulv, eps,
        params["z2emb"]["w_t"], params["z2emb"]["b"], params["G"]["wih_t"])

    # --- decode: LSTM_G with the vocab projection fused per timestep ---
    logits = decoder_forward(xp_g, zproj, params["G"]["whh_t"],
                             params["proj"]["w_t"], params["proj"]["b"])
    return mu, logvar, z, logits


# ----------------------------- main -----------------------------

if __name__ == "__main__":
    # Small synthetic config (args.*): vocab=128, dim_emb=32, dim_h=32,
    # dim_z=16, nlayers=1, dropout=0.0 (eval).
    VOCAB, DIM_EMB, DIM_H, DIM_Z = 128, 32, 32, 16
    T, B = 8, 8

    root = jax.random.PRNGKey(0)
    k_params, k_ids, k_eps = jax.random.split(root, 3)

    params = make_dae_params(k_params, VOCAB, DIM_EMB, DIM_H, DIM_Z)
    input_ids = jax.random.randint(k_ids, (T, B), 0, VOCAB, dtype=jnp.int32)

    mu, logvar, z, logits = dae_forward(params, input_ids, k_eps)
    jax.block_until_ready((mu, logvar, z, logits))

    assert mu.shape == (B, DIM_Z)
    assert logvar.shape == (B, DIM_Z)
    assert z.shape == (B, DIM_Z)
    assert logits.shape == (T, B, VOCAB)
    assert bool(jnp.all(jnp.isfinite(mu)))
    assert bool(jnp.all(jnp.isfinite(logvar)))
    assert bool(jnp.all(jnp.isfinite(z)))
    assert bool(jnp.all(jnp.isfinite(logits)))

    # TODO(synk): training-time paths (word noise, embedding noise, dropout
    # masks, Adam step, nll_is importance sampling) are not part of the eval
    # forward pass and are not implemented.
    print("KERNEL_OK")
</pallas_src>

<mosaic_0001>
module attributes {stable_mosaic.version = 11 : i64} {
  func.func @_linear_kernel(%arg0: memref<64x32xf32, #tpu.memory_space<vmem>>, %arg1: memref<32x384xf32, #tpu.memory_space<vmem>>, %arg2: memref<1x384xf32, #tpu.memory_space<vmem>>, %arg3: memref<64x384xf32, #tpu.memory_space<vmem>>) attributes {dimension_semantics = [], scalar_prefetch = 0 : i64, scratch_operands = 0 : i64, tpu.core_type = #tpu.core_type<tc>} {
    %c0 = arith.constant 0 : index
    %c0_0 = arith.constant 0 : index
    %0 = vector.load %arg0[%c0, %c0_0] : memref<64x32xf32, #tpu.memory_space<vmem>>, vector<64x32xf32>
    %c0_1 = arith.constant 0 : index
    %c0_2 = arith.constant 0 : index
    %1 = vector.load %arg1[%c0_1, %c0_2] : memref<32x384xf32, #tpu.memory_space<vmem>>, vector<32x384xf32>
    %cst = arith.constant dense<0.000000e+00> : vector<64x384xf32>
    %2 = tpu.matmul %0, %1, %cst {dimension_numbers = #tpu.dot_dimension_numbers<[1], [0], [0], [1], [0, 0, 1, 1], [], []>} : vector<64x32xf32>, vector<32x384xf32>, vector<64x384xf32> -> vector<64x384xf32>
    %c0_3 = arith.constant 0 : index
    %c0_4 = arith.constant 0 : index
    %3 = vector.load %arg2[%c0_3, %c0_4] : memref<1x384xf32, #tpu.memory_space<vmem>>, vector<1x384xf32>
    %4 = vector.broadcast %3 : vector<1x384xf32> to vector<64x384xf32>
    %5 = arith.addf %2, %4 : vector<64x384xf32>
    %c0_5 = arith.constant 0 : index
    %c0_6 = arith.constant 0 : index
    %6 = vector.load %arg3[%c0_5, %c0_6] : memref<64x384xf32, #tpu.memory_space<vmem>>, vector<64x384xf32>
    tpu.vector_store %arg3[%c0_5, %c0_6], %5 {strides = array<i32>} : memref<64x384xf32, #tpu.memory_space<vmem>>, vector<64x384xf32>,
    return
  }
}

module attributes {stable_mosaic.version = 11 : i64} {
  func.func @_bilstm_kernel(%arg0: i32, %arg1: memref<1x8x8x128xf32, #tpu.memory_space<vmem>>, %arg2: memref<1x32x128xf32, #tpu.memory_space<vmem>>, %arg3: memref<1x8x32xf32, #tpu.memory_space<vmem>>) attributes {dimension_semantics = [#tpu.dimension_semantics<parallel>], iteration_bounds = array<i64: 2>, scalar_prefetch = 0 : i64, scratch_operands = 0 : i64, tpu.core_type = #tpu.core_type<tc>, window_params = [{transform_indices = @transform_0, window_bounds = array<i64: 1, 8, 8, 128>}, {transform_indices = @transform_1, window_bounds = array<i64: 1, 32, 128>}, {transform_indices = @transform_2, window_bounds = array<i64: 1, 8, 32>}]} {
    %c0 = arith.constant 0 : index
    %c0_0 = arith.constant 0 : index
    %c0_1 = arith.constant 0 : index
    %0 = vector.load %arg2[%c0, %c0_0, %c0_1] : memref<1x32x128xf32, #tpu.memory_space<vmem>>, vector<1x32x128xf32>
    %1 = vector.shape_cast %0 : vector<1x32x128xf32> to vector<32x128xf32>
    %cst = arith.constant 0.000000e+00 : f32
    %2 = vector.broadcast %cst : f32 to vector<8x32xf32>
    %cst_2 = arith.constant 0.000000e+00 : f32
    %3 = vector.broadcast %cst_2 : f32 to vector<8x32xf32>
    %c0_i32 = arith.constant 0 : i32
    %c0_i32_3 = arith.constant 0 : i32
    %4 = arith.cmpi eq, %arg0, %c0_i32_3 : i32
    %c7_i32 = arith.constant 7 : i32
    %5 = arith.subi %c7_i32, %c0_i32 : i32
    %6 = arith.select %4, %c0_i32, %5 : i32
    %c0_4 = arith.constant 0 : index
    %7 = arith.index_cast %6 : i32 to index
    %c0_5 = arith.constant 0 : index
    %c0_6 = arith.constant 0 : index
    %8 = vector.load %arg1[%c0_4, %7, %c0_5, %c0_6] : memref<1x8x8x128xf32, #tpu.memory_space<vmem>>, vector<1x1x8x128xf32>
    %9 = vector.shape_cast %8 : vector<1x1x8x128xf32> to vector<8x128xf32>
    %cst_7 = arith.constant dense<0.000000e+00> : vector<8x128xf32>
    %10 = tpu.matmul %2, %1, %cst_7 {dimension_numbers = #tpu.dot_dimension_numbers<[1], [0], [0], [1], [0, 0, 1, 1], [], []>} : vector<8x32xf32>, vector<32x128xf32>, vector<8x128xf32> -> vector<8x128xf32>
    %11 = arith.addf %9, %10 : vector<8x128xf32>
    %12 = vector.extract_strided_slice %11 {offsets = [0, 0], sizes = [8, 32], strides = [1, 1]} : vector<8x128xf32> to vector<8x32xf32>
    %13 = arith.negf %12 : vector<8x32xf32>
    %14 = math.exp %13 : vector<8x32xf32>
    %cst_8 = arith.constant 1.000000e+00 : f32
    %15 = vector.broadcast %cst_8 : f32 to vector<8x32xf32>
    %16 = arith.addf %15, %14 : vector<8x32xf32>
    %17 = arith.divf %15, %16 : vector<8x32xf32>
    %18 = vector.extract_strided_slice %11 {offsets = [0, 32], sizes = [8, 32], strides = [1, 1]} : vector<8x128xf32> to vector<8x32xf32>
    %19 = arith.negf %18 : vector<8x32xf32>
    %20 = math.exp %19 : vector<8x32xf32>
    %cst_9 = arith.constant 1.000000e+00 : f32
    %21 = vector.broadcast %cst_9 : f32 to vector<8x32xf32>
    %22 = arith.addf %21, %20 : vector<8x32xf32>
    %23 = arith.divf %21, %22 : vector<8x32xf32>
    %24 = vector.extract_strided_slice %11 {offsets = [0, 64], sizes = [8, 32], strides = [1, 1]} : vector<8x128xf32> to vector<8x32xf32>
    %25 = math.tanh %24 : vector<8x32xf32>
    %26 = vector.extract_strided_slice %11 {offsets = [0, 96], sizes = [8, 32], strides = [1, 1]} : vector<8x128xf32> to vector<8x32xf32>
    %27 = arith.negf %26 : vector<8x32xf32>
    %28 = math.exp %27 : vector<8x32xf32>
    %cst_10 = arith.constant 1.000000e+00 : f32
    %29 = vector.broadcast %cst_10 : f32 to vector<8x32xf32>
    %30 = arith.addf %29, %28 : vector<8x32xf32>
    %31 = arith.divf %29, %30 : vector<8x32xf32>
    %32 = arith.mulf %23, %3 : vector<8x32xf32>
    %33 = arith.mulf %17, %25 : vector<8x32xf32>
    %34 = arith.addf %32, %33 : vector<8x32xf32>
    %35 = math.tanh %34 : vector<8x32xf32>
    %36 = arith.mulf %31, %35 : vector<8x32xf32>
    %c1_i32 = arith.constant 1 : i32
    %c0_i32_11 = arith.constant 0 : i32
    %37 = arith.cmpi eq, %arg0, %c0_i32_11 : i32
    %c7_i32_12 = arith.constant 7 : i32
    %38 = arith.subi %c7_i32_12, %c1_i32 : i32
    %39 = arith.select %37, %c1_i32, %38 : i32
    %c0_13 = arith.constant 0 : index
    %40 = arith.index_cast %39 : i32 to index
    %c0_14 = arith.constant 0 : index
    %c0_15 = arith.constant 0 : index
    %41 = vector.load %arg1[%c0_13, %40, %c0_14, %c0_15] : memref<1x8x8x128xf32, #tpu.memory_space<vmem>>, vector<1x1x8x128xf32>
    %42 = vector.shape_cast %41 : vector<1x1x8x128xf32> to vector<8x128xf32>
    %cst_16 = arith.constant dense<0.000000e+00> : vector<8x128xf32>
    %43 = tpu.matmul %36, %1, %cst_16 {dimension_numbers = #tpu.dot_dimension_numbers<[1], [0], [0], [1], [0, 0, 1, 1], [], []>} : vector<8x32xf32>, vector<32x128xf32>, vector<8x128xf32> -> vector<8x128xf32>
    %44 = arith.addf %42, %43 : vector<8x128xf32>
    %45 = vector.extract_strided_slice %44 {offsets = [0, 0], sizes = [8, 32], strides = [1, 1]} : vector<8x128xf32> to vector<8x32xf32>
    %46 = arith.negf %45 : vector<8x32xf32>
    %47 = math.exp %46 : vector<8x32xf32>
    %cst_17 = arith.constant 1.000000e+00 : f32
    %48 = vector.broadcast %cst_17 : f32 to vector<8x32xf32>
    %49 = arith.addf %48, %47 : vector<8x32xf32>
    %50 = arith.divf %48, %49 : vector<8x32xf32>
    %51 = vector.extract_strided_slice %44 {offsets = [0, 32], sizes = [8, 32], strides = [1, 1]} : vector<8x128xf32> to vector<8x32xf32>
    %52 = arith.negf %51 : vector<8x32xf32>
    %53 = math.exp %52 : vector<8x32xf32>
    %cst_18 = arith.constant 1.000000e+00 : f32
    %54 = vector.broadcast %cst_18 : f32 to vector<8x32xf32>
    %55 = arith.addf %54, %53 : vector<8x32xf32>
    %56 = arith.divf %54, %55 : vector<8x32xf32>
    %57 = vector.extract_strided_slice %44 {offsets = [0, 64], sizes = [8, 32], strides = [1, 1]} : vector<8x128xf32> to vector<8x32xf32>
    %58 = math.tanh %57 : vector<8x32xf32>
    %59 = vector.extract_strided_slice %44 {offsets = [0, 96], sizes = [8, 32], strides = [1, 1]} : vector<8x128xf32> to vector<8x32xf32>
    %60 = arith.negf %59 : vector<8x32xf32>
    %61 = math.exp %60 : vector<8x32xf32>
    %cst_19 = arith.constant 1.000000e+00 : f32
    %62 = vector.broadcast %cst_19 : f32 to vector<8x32xf32>
    %63 = arith.addf %62, %61 : vector<8x32xf32>
    %64 = arith.divf %62, %63 : vector<8x32xf32>
    %65 = arith.mulf %56, %34 : vector<8x32xf32>
    %66 = arith.mulf %50, %58 : vector<8x32xf32>
    %67 = arith.addf %65, %66 : vector<8x32xf32>
    %68 = math.tanh %67 : vector<8x32xf32>
    %69 = arith.mulf %64, %68 : vector<8x32xf32>
    %c2_i32 = arith.constant 2 : i32
    %c0_i32_20 = arith.constant 0 : i32
    %70 = arith.cmpi eq, %arg0, %c0_i32_20 : i32
    %c7_i32_21 = arith.constant 7 : i32
    %71 = arith.subi %c7_i32_21, %c2_i32 : i32
    %72 = arith.select %70, %c2_i32, %71 : i32
    %c0_22 = arith.constant 0 : index
    %73 = arith.index_cast %72 : i32 to index
    %c0_23 = arith.constant 0 : index
    %c0_24 = arith.constant 0 : index
    %74 = vector.load %arg1[%c0_22, %73, %c0_23, %c0_24] : memref<1x8x8x128xf32, #tpu.memory_space<vmem>>, vector<1x1x8x128xf32>
    %75 = vector.shape_cast %74 : vector<1x1x8x128xf32> to vector<8x128xf32>
    %cst_25 = arith.constant dense<0.000000e+00> : vector<8x128xf32>
    %76 = tpu.matmul %69, %1, %cst_25 {dimension_numbers = #tpu.dot_dimension_numbers<[1], [0], [0], [1], [0, 0, 1, 1], [], []>} : vector<8x32xf32>, vector<32x128xf32>, vector<8x128xf32> -> vector<8x128xf32>
    %77 = arith.addf %75, %76 : vector<8x128xf32>
    %78 = vector.extract_strided_slice %77 {offsets = [0, 0], sizes = [8, 32], strides = [1, 1]} : vector<8x128xf32> to vector<8x32xf32>
    %79 = arith.negf %78 : vector<8x32xf32>
    %80 = math.exp %79 : vector<8x32xf32>
    %cst_26 = arith.constant 1.000000e+00 : f32
    %81 = vector.broadcast %cst_26 : f32 to vector<8x32xf32>
    %82 = arith.addf %81, %80 : vector<8x32xf32>
    %83 = arith.divf %81, %82 : vector<8x32xf32>
    %84 = vector.extract_strided_slice %77 {offsets = [0, 32], sizes = [8, 32], strides = [1, 1]} : vector<8x128xf32> to vector<8x32xf32>
    %85 = arith.negf %84 : vector<8x32xf32>
    %86 = math.exp %85 : vector<8x32xf32>
    %cst_27 = arith.constant 1.000000e+00 : f32
    %87 = vector.broadcast %cst_27 : f32 to vector<8x32xf32>
    %88 = arith.addf %87, %86 : vector<8x32xf32>
    %89 = arith.divf %87, %88 : vector<8x32xf32>
    %90 = vector.extract_strided_slice %77 {offsets = [0, 64], sizes = [8, 32], strides = [1, 1]} : vector<8x128xf32> to vector<8x32xf32>
    %91 = math.tanh %90 : vector<8x32xf32>
    %92 = vector.extract_strided_slice %77 {offsets = [0, 96], sizes = [8, 32], strides = [1, 1]} : vector<8x128xf32> to vector<8x32xf32>
    %93 = arith.negf %92 : vector<8x32xf32>
    %94 = math.exp %93 : vector<8x32xf32>
    %cst_28 = arith.constant 1.000000e+00 : f32
    %95 = vector.broadcast %cst_28 : f32 to vector<8x32xf32>
    %96 = arith.addf %95, %94 : vector<8x32xf32>
    %97 = arith.divf %95, %96 : vector<8x32xf32>
    %98 = arith.mulf %89, %67 : vector<8x32xf32>
    %99 = arith.mulf %83, %91 : vector<8x32xf32>
    %100 = arith.addf %98, %99 : vector<8x32xf32>
    %101 = math.tanh %100 : vector<8x32xf32>
    %102 = arith.mulf %97, %101 : vector<8x32xf32>
    %c3_i32 = arith.constant 3 : i32
    %c0_i32_29 = arith.constant 0 : i32
    %103 = arith.cmpi eq, %arg0, %c0_i32_29 : i32
    %c7_i32_30 = arith.constant 7 : i32
    %104 = arith.subi %c7_i32_30, %c3_i32 : i32
    %105 = arith.select %103, %c3_i32, %104 : i32
    %c0_31 = arith.constant 0 : index
    %106 = arith.index_cast %105 : i32 to index
    %c0_32 = arith.constant 0 : index
    %c0_33 = arith.constant 0 : index
    %107 = vector.load %arg1[%c0_31, %106, %c0_32, %c0_33] : memref<1x8x8x128xf32, #tpu.memory_space<vmem>>, vector<1x1x8x128xf32>
    %108 = vector.shape_cast %107 : vector<1x1x8x128xf32> to vector<8x128xf32>
    %cst_34 = arith.constant dense<0.000000e+00> : vector<8x128xf32>
    %109 = tpu.matmul %102, %1, %cst_34 {dimension_numbers = #tpu.dot_dimension_numbers<[1], [0], [0], [1], [0, 0, 1, 1], [], []>} : vector<8x32xf32>, vector<32x128xf32>, vector<8x128xf32> -> vector<8x128xf32>
    %110 = arith.addf %108, %109 : vector<8x128xf32>
    %111 = vector.extract_strided_slice %110 {offsets = [0, 0], sizes = [8, 32], strides = [1, 1]} : vector<8x128xf32> to vector<8x32xf32>
    %112 = arith.negf %111 : vector<8x32xf32>
    %113 = math.exp %112 : vector<8x32xf32>
    %cst_35 = arith.constant 1.000000e+00 : f32
    %114 = vector.broadcast %cst_35 : f32 to vector<8x32xf32>
    %115 = arith.addf %114, %113 : vector<8x32xf32>
    %116 = arith.divf %114, %115 : vector<8x32xf32>
    %117 = vector.extract_strided_slice %110 {offsets = [0, 32], sizes = [8, 32], strides = [1, 1]} : vector<8x128xf32> to vector<8x32xf32>
    %118 = arith.negf %117 : vector<8x32xf32>
    %119 = math.exp %118 : vector<8x32xf32>
    %cst_36 = arith.constant 1.000000e+00 : f32
    %120 = vector.broadcast %cst_36 : f32 to vector<8x32xf32>
    %121 = arith.addf %120, %119 : vector<8x32xf32>
    %122 = arith.divf %120, %121 : vector<8x32xf32>
    %123 = vector.extract_strided_slice %110 {offsets = [0, 64], sizes = [8, 32], strides = [1, 1]} : vector<8x128xf32> to vector<8x32xf32>
    %124 = math.tanh %123 : vector<8x32xf32>
    %125 = vector.extract_strided_slice %110 {offsets = [0, 96], sizes = [8, 32], strides = [1, 1]} : vector<8x128xf32> to vector<8x32xf32>
    %126 = arith.negf %125 : vector<8x32xf32>
    %127 = math.exp %126 : vector<8x32xf32>
    %cst_37 = arith.constant 1.000000e+00 : f32
    %128 = vector.broadcast %cst_37 : f32 to vector<8x32xf32>
    %129 = arith.addf %128, %127 : vector<8x32xf32>
    %130 = arith.divf %128, %129 : vector<8x32xf32>
    %131 = arith.mulf %122, %100 : vector<8x32xf32>
    %132 = arith.mulf %116, %124 : vector<8x32xf32>
    %133 = arith.addf %131, %132 : vector<8x32xf32>
    %134 = math.tanh %133 : vector<8x32xf32>
    %135 = arith.mulf %130, %134 : vector<8x32xf32>
    %c4_i32 = arith.constant 4 : i32
    %c0_i32_38 = arith.constant 0 : i32
    %136 = arith.cmpi eq, %arg0, %c0_i32_38 : i32
    %c7_i32_39 = arith.constant 7 : i32
    %137 = arith.subi %c7_i32_39, %c4_i32 : i32
    %138 = arith.select %136, %c4_i32, %137 : i32
    %c0_40 = arith.constant 0 : index
    %139 = arith.index_cast %138 : i32 to index
    %c0_41 = arith.constant 0 : index
    %c0_42 = arith.constant 0 : index
    %140 = vector.load %arg1[%c0_40, %139, %c0_41, %c0_42] : memref<1x8x8x128xf32, #tpu.memory_space<vmem>>, vector<1x1x8x128xf32>
    %141 = vector.shape_cast %140 : vector<1x1x8x128xf32> to vector<8x128xf32>
    %cst_43 = arith.constant dense<0.000000e+00> : vector<8x128xf32>
    %142 = tpu.matmul %135, %1, %cst_43 {dimension_numbers = #tpu.dot_dimension_numbers<[1], [0], [0], [1], [0, 0, 1, 1], [], []>} : vector<8x32xf32>, vector<32x128xf32>, vector<8x128xf32> -> vector<8x128xf32>
    %143 = arith.addf %141, %142 : vector<8x128xf32>
    %144 = vector.extract_strided_slice %143 {offsets = [0, 0], sizes = [8, 32], strides = [1, 1]} : vector<8x128xf32> to vector<8x32xf32>
    %145 = arith.negf %144 : vector<8x32xf32>
    %146 = math.exp %145 : vector<8x32xf32>
    %cst_44 = arith.constant 1.000000e+00 : f32
    %147 = vector.broadcast %cst_44 : f32 to vector<8x32xf32>
    %148 = arith.addf %147, %146 : vector<8x32xf32>
    %149 = arith.divf %147, %148 : vector<8x32xf32>
    %150 = vector.extract_strided_slice %143 {offsets = [0, 32], sizes = [8, 32], strides = [1, 1]} : vector<8x128xf32> to vector<8x32xf32>
    %151 = arith.negf %150 : vector<8x32xf32>
    %152 = math.exp %151 : vector<8x32xf32>
    %cst_45 = arith.constant 1.000000e+00 : f32
    %153 = vector.broadcast %cst_45 : f32 to vector<8x32xf32>
    %154 = arith.addf %153, %152 : vector<8x32xf32>
    %155 = arith.divf %153, %154 : vector<8x32xf32>
    %156 = vector.extract_strided_slice %143 {offsets = [0, 64], sizes = [8, 32], strides = [1, 1]} : vector<8x128xf32> to vector<8x32xf32>
    %157 = math.tanh %156 : vector<8x32xf32>
    %158 = vector.extract_strided_slice %143 {offsets = [0, 96], sizes = [8, 32], strides = [1, 1]} : vector<8x128xf32> to vector<8x32xf32>
    %159 = arith.negf %158 : vector<8x32xf32>
    %160 = math.exp %159 : vector<8x32xf32>
    %cst_46 = arith.constant 1.000000e+00 : f32
    %161 = vector.broadcast %cst_46 : f32 to vector<8x32xf32>
    %162 = arith.addf %161, %160 : vector<8x32xf32>
    %163 = arith.divf %161, %162 : vector<8x32xf32>
    %164 = arith.mulf %155, %133 : vector<8x32xf32>
    %165 = arith.mulf %149, %157 : vector<8x32xf32>
    %166 = arith.addf %164, %165 : vector<8x32xf32>
    %167 = math.tanh %166 : vector<8x32xf32>
    %168 = arith.mulf %163, %167 : vector<8x32xf32>
    %c5_i32 = arith.constant 5 : i32
    %c0_i32_47 = arith.constant 0 : i32
    %169 = arith.cmpi eq, %arg0, %c0_i32_47 : i32
    %c7_i32_48 = arith.constant 7 : i32
    %170 = arith.subi %c7_i32_48, %c5_i32 : i32
    %171 = arith.select %169, %c5_i32, %170 : i32
    %c0_49 = arith.constant 0 : index
    %172 = arith.index_cast %171 : i32 to index
    %c0_50 = arith.constant 0 : index
    %c0_51 = arith.constant 0 : index
    %173 = vector.load %arg1[%c0_49, %172, %c0_50, %c0_51] : memref<1x8x8x128xf32, #tpu.memory_space<vmem>>, vector<1x1x8x128xf32>
    %174 = vector.shape_cast %173 : vector<1x1x8x128xf32> to vector<8x128xf32>
    %cst_52 = arith.constant dense<0.000000e+00> : vector<8x128xf32>
    %175 = tpu.matmul %168, %1, %cst_52 {dimension_numbers = #tpu.dot_dimension_numbers<[1], [0], [0], [1], [0, 0, 1, 1], [], []>} : vector<8x32xf32>, vector<32x128xf32>, vector<8x128xf32> -> vector<8x128xf32>
    %176 = arith.addf %174, %175 : vector<8x128xf32>
    %177 = vector.extract_strided_slice %176 {offsets = [0, 0], sizes = [8, 32], strides = [1, 1]} : vector<8x128xf32> to vector<8x32xf32>
    %178 = arith.negf %177 : vector<8x32xf32>
    %179 = math.exp %178 : vector<8x32xf32>
    %cst_53 = arith.constant 1.000000e+00 : f32
    %180 = vector.broadcast %cst_53 : f32 to vector<8x32xf32>
    %181 = arith.addf %180, %179 : vector<8x32xf32>
    %182 = arith.divf %180, %181 : vector<8x32xf32>
    %183 = vector.extract_strided_slice %176 {offsets = [0, 32], sizes = [8, 32], strides = [1, 1]} : vector<8x128xf32> to vector<8x32xf32>
    %184 = arith.negf %183 : vector<8x32xf32>
    %185 = math.exp %184 : vector<8x32xf32>
    %cst_54 = arith.constant 1.000000e+00 : f32
    %186 = vector.broadcast %cst_54 : f32 to vector<8x32xf32>
    %187 = arith.addf %186, %185 : vector<8x32xf32>
    %188 = arith.divf %186, %187 : vector<8x32xf32>
    %189 = vector.extract_strided_slice %176 {offsets = [0, 64], sizes = [8, 32], strides = [1, 1]} : vector<8x128xf32> to vector<8x32xf32>
    %190 = math.tanh %189 : vector<8x32xf32>
    %191 = vector.extract_strided_slice %176 {offsets = [0, 96], sizes = [8, 32], strides = [1, 1]} : vector<8x128xf32> to vector<8x32xf32>
    %192 = arith.negf %191 : vector<8x32xf32>
    %193 = math.exp %192 : vector<8x32xf32>
    %cst_55 = arith.constant 1.000000e+00 : f32
    %194 = vector.broadcast %cst_55 : f32 to vector<8x32xf32>
    %195 = arith.addf %194, %193 : vector<8x32xf32>
    %196 = arith.divf %194, %195 : vector<8x32xf32>
    %197 = arith.mulf %188, %166 : vector<8x32xf32>
    %198 = arith.mulf %182, %190 : vector<8x32xf32>
    %199 = arith.addf %197, %198 : vector<8x32xf32>
    %200 = math.tanh %199 : vector<8x32xf32>
    %201 = arith.mulf %196, %200 : vector<8x32xf32>
    %c6_i32 = arith.constant 6 : i32
    %c0_i32_56 = arith.constant 0 : i32
    %202 = arith.cmpi eq, %arg0, %c0_i32_56 : i32
    %c7_i32_57 = arith.constant 7 : i32
    %203 = arith.subi %c7_i32_57, %c6_i32 : i32
    %204 = arith.select %202, %c6_i32, %203 : i32
    %c0_58 = arith.constant 0 : index
    %205 = arith.index_cast %204 : i32 to index
    %c0_59 = arith.constant 0 : index
    %c0_60 = arith.constant 0 : index
    %206 = vector.load %arg1[%c0_58, %205, %c0_59, %c0_60] : memref<1x8x8x128xf32, #tpu.memory_space<vmem>>, vector<1x1x8x128xf32>
    %207 = vector.shape_cast %206 : vector<1x1x8x128xf32> to vector<8x128xf32>
    %cst_61 = arith.constant dense<0.000000e+00> : vector<8x128xf32>
    %208 = tpu.matmul %201, %1, %cst_61 {dimension_numbers = #tpu.dot_dimension_numbers<[1], [0], [0], [1], [0, 0, 1, 1], [], []>} : vector<8x32xf32>, vector<32x128xf32>, vector<8x128xf32> -> vector<8x128xf32>
    %209 = arith.addf %207, %208 : vector<8x128xf32>
    %210 = vector.extract_strided_slice %209 {offsets = [0, 0], sizes = [8, 32], strides = [1, 1]} : vector<8x128xf32> to vector<8x32xf32>
    %211 = arith.negf %210 : vector<8x32xf32>
    %212 = math.exp %211 : vector<8x32xf32>
    %cst_62 = arith.constant 1.000000e+00 : f32
    %213 = vector.broadcast %cst_62 : f32 to vector<8x32xf32>
    %214 = arith.addf %213, %212 : vector<8x32xf32>
    %215 = arith.divf %213, %214 : vector<8x32xf32>
    %216 = vector.extract_strided_slice %209 {offsets = [0, 32], sizes = [8, 32], strides = [1, 1]} : vector<8x128xf32> to vector<8x32xf32>
    %217 = arith.negf %216 : vector<8x32xf32>
    %218 = math.exp %217 : vector<8x32xf32>
    %cst_63 = arith.constant 1.000000e+00 : f32
    %219 = vector.broadcast %cst_63 : f32 to vector<8x32xf32>
    %220 = arith.addf %219, %218 : vector<8x32xf32>
    %221 = arith.divf %219, %220 : vector<8x32xf32>
    %222 = vector.extract_strided_slice %209 {offsets = [0, 64], sizes = [8, 32], strides = [1, 1]} : vector<8x128xf32> to vector<8x32xf32>
    %223 = math.tanh %222 : vector<8x32xf32>
    %224 = vector.extract_strided_slice %209 {offsets = [0, 96], sizes = [8, 32], strides = [1, 1]} : vector<8x128xf32> to vector<8x32xf32>
    %225 = arith.negf %224 : vector<8x32xf32>
    %226 = math.exp %225 : vector<8x32xf32>
    %cst_64 = arith.constant 1.000000e+00 : f32
    %227 = vector.broadcast %cst_64 : f32 to vector<8x32xf32>
    %228 = arith.addf %227, %226 : vector<8x32xf32>
    %229 = arith.divf %227, %228 : vector<8x32xf32>
    %230 = arith.mulf %221, %199 : vector<8x32xf32>
    %231 = arith.mulf %215, %223 : vector<8x32xf32>
    %232 = arith.addf %230, %231 : vector<8x32xf32>
    %233 = math.tanh %232 : vector<8x32xf32>
    %234 = arith.mulf %229, %233 : vector<8x32xf32>
    %c7_i32_65 = arith.constant 7 : i32
    %c0_i32_66 = arith.constant 0 : i32
    %235 = arith.cmpi eq, %arg0, %c0_i32_66 : i32
    %c7_i32_67 = arith.constant 7 : i32
    %236 = arith.subi %c7_i32_67, %c7_i32_65 : i32
    %237 = arith.select %235, %c7_i32_65, %236 : i32
    %c0_68 = arith.constant 0 : index
    %238 = arith.index_cast %237 : i32 to index
    %c0_69 = arith.constant 0 : index
    %c0_70 = arith.constant 0 : index
    %239 = vector.load %arg1[%c0_68, %238, %c0_69, %c0_70] : memref<1x8x8x128xf32, #tpu.memory_space<vmem>>, vector<1x1x8x128xf32>
    %240 = vector.shape_cast %239 : vector<1x1x8x128xf32> to vector<8x128xf32>
    %cst_71 = arith.constant dense<0.000000e+00> : vector<8x128xf32>
    %241 = tpu.matmul %234, %1, %cst_71 {dimension_numbers = #tpu.dot_dimension_numbers<[1], [0], [0], [1], [0, 0, 1, 1], [], []>} : vector<8x32xf32>, vector<32x128xf32>, vector<8x128xf32> -> vector<8x128xf32>
    %242 = arith.addf %240, %241 : vector<8x128xf32>
    %243 = vector.extract_strided_slice %242 {offsets = [0, 0], sizes = [8, 32], strides = [1, 1]} : vector<8x128xf32> to vector<8x32xf32>
    %244 = arith.negf %243 : vector<8x32xf32>
    %245 = math.exp %244 : vector<8x32xf32>
    %cst_72 = arith.constant 1.000000e+00 : f32
    %246 = vector.broadcast %cst_72 : f32 to vector<8x32xf32>
    %247 = arith.addf %246, %245 : vector<8x32xf32>
    %248 = arith.divf %246, %247 : vector<8x32xf32>
    %249 = vector.extract_strided_slice %242 {offsets = [0, 32], sizes = [8, 32], strides = [1, 1]} : vector<8x128xf32> to vector<8x32xf32>
    %250 = arith.negf %249 : vector<8x32xf32>
    %251 = math.exp %250 : vector<8x32xf32>
    %cst_73 = arith.constant 1.000000e+00 : f32
    %252 = vector.broadcast %cst_73 : f32 to vector<8x32xf32>
    %253 = arith.addf %252, %251 : vector<8x32xf32>
    %254 = arith.divf %252, %253 : vector<8x32xf32>
    %255 = vector.extract_strided_slice %242 {offsets = [0, 64], sizes = [8, 32], strides = [1, 1]} : vector<8x128xf32> to vector<8x32xf32>
    %256 = math.tanh %255 : vector<8x32xf32>
    %257 = vector.extract_strided_slice %242 {offsets = [0, 96], sizes = [8, 32], strides = [1, 1]} : vector<8x128xf32> to vector<8x32xf32>
    %258 = arith.negf %257 : vector<8x32xf32>
    %259 = math.exp %258 : vector<8x32xf32>
    %cst_74 = arith.constant 1.000000e+00 : f32
    %260 = vector.broadcast %cst_74 : f32 to vector<8x32xf32>
    %261 = arith.addf %260, %259 : vector<8x32xf32>
    %262 = arith.divf %260, %261 : vector<8x32xf32>
    %263 = arith.mulf %254, %232 : vector<8x32xf32>
    %264 = arith.mulf %248, %256 : vector<8x32xf32>
    %265 = arith.addf %263, %264 : vector<8x32xf32>
    %266 = math.tanh %265 : vector<8x32xf32>
    %267 = arith.mulf %262, %266 : vector<8x32xf32>
    %c8_i32 = arith.constant 8 : i32
    %c0_75 = arith.constant 0 : index
    %c0_76 = arith.constant 0 : index
    %c0_77 = arith.constant 0 : index
    %268 = vector.load %arg3[%c0_75, %c0_76, %c0_77] : memref<1x8x32xf32, #tpu.memory_space<vmem>>, vector<1x8x32xf32>
    %269 = vector.shape_cast %268 : vector<1x8x32xf32> to vector<8x32xf32>
    %270 = vector.shape_cast %267 : vector<8x32xf32> to vector<1x8x32xf32>
    tpu.vector_store %arg3[%c0_75, %c0_76, %c0_77], %270 {strides = array<i32>} : memref<1x8x32xf32, #tpu.memory_space<vmem>>, vector<1x8x32xf32>,
    return
  }
  func.func @transform_0(%arg0: i32) -> (i32, i32, i32, i32) {
    %c0_i32 = arith.constant 0 : i32
    %c0_i32_0 = arith.constant 0 : i32
    %c0_i32_1 = arith.constant 0 : i32
    %c0_i32_2 = arith.constant 0 : i32
    return %arg0, %c0_i32, %c0_i32_0, %c0_i32_1 : i32, i32, i32, i32
  }
  func.func @transform_1(%arg0: i32) -> (i32, i32, i32) {
    %c0_i32 = arith.constant 0 : i32
    %c0_i32_0 = arith.constant 0 : i32
    %c0_i32_1 = arith.constant 0 : i32
    return %arg0, %c0_i32, %c0_i32_0 : i32, i32, i32
  }
  func.func @transform_2(%arg0: i32) -> (i32, i32, i32) {
    %c0_i32 = arith.constant 0 : i32
    %c0_i32_0 = arith.constant 0 : i32
    %c0_i32_1 = arith.constant 0 : i32
    return %arg0, %c0_i32, %c0_i32_0 : i32, i32, i32
  }
}

module attributes {stable_mosaic.version = 11 : i64} {
  func.func @_latent_kernel(%arg0: memref<2x8x32xf32, #tpu.memory_space<vmem>>, %arg1: memref<64x32xf32, #tpu.memory_space<vmem>>, %arg2: memref<1x32xf32, #tpu.memory_space<vmem>>, %arg3: memref<8x16xf32, #tpu.memory_space<vmem>>, %arg4: memref<16x32xf32, #tpu.memory_space<vmem>>, %arg5: memref<1x32xf32, #tpu.memory_space<vmem>>, %arg6: memref<32x128xf32, #tpu.memory_space<vmem>>, %arg7: memref<8x16xf32, #tpu.memory_space<vmem>>, %arg8: memref<8x16xf32, #tpu.memory_space<vmem>>, %arg9: memref<8x16xf32, #tpu.memory_space<vmem>>, %arg10: memref<8x128xf32, #tpu.memory_space<vmem>>) attributes {dimension_semantics = [], scalar_prefetch = 0 : i64, scratch_operands = 0 : i64, tpu.core_type = #tpu.core_type<tc>} {
    %c0 = arith.constant 0 : index
    %c0_0 = arith.constant 0 : index
    %c0_1 = arith.constant 0 : index
    %0 = vector.load %arg0[%c0, %c0_0, %c0_1] : memref<2x8x32xf32, #tpu.memory_space<vmem>>, vector<1x8x32xf32>
    %1 = vector.shape_cast %0 : vector<1x8x32xf32> to vector<8x32xf32>
    %c1 = arith.constant 1 : index
    %c0_2 = arith.constant 0 : index
    %c0_3 = arith.constant 0 : index
    %2 = vector.load %arg0[%c1, %c0_2, %c0_3] : memref<2x8x32xf32, #tpu.memory_space<vmem>>, vector<1x8x32xf32>
    %3 = vector.shape_cast %2 : vector<1x8x32xf32> to vector<8x32xf32>
    %4 = tpu.concatenate %1, %3 in 1 : vector<8x32xf32>, vector<8x32xf32> -> vector<8x64xf32>
    %c0_4 = arith.constant 0 : index
    %c0_5 = arith.constant 0 : index
    %5 = vector.load %arg1[%c0_4, %c0_5] : memref<64x32xf32, #tpu.memory_space<vmem>>, vector<64x32xf32>
    %cst = arith.constant dense<0.000000e+00> : vector<8x32xf32>
    %6 = tpu.matmul %4, %5, %cst {dimension_numbers = #tpu.dot_dimension_numbers<[1], [0], [0], [1], [0, 0, 1, 1], [], []>} : vector<8x64xf32>, vector<64x32xf32>, vector<8x32xf32> -> vector<8x32xf32>
    %c0_6 = arith.constant 0 : index
    %c0_7 = arith.constant 0 : index
    %7 = vector.load %arg2[%c0_6, %c0_7] : memref<1x32xf32, #tpu.memory_space<vmem>>, vector<1x32xf32>
    %8 = vector.broadcast %7 : vector<1x32xf32> to vector<8x32xf32>
    %9 = arith.addf %6, %8 : vector<8x32xf32>
    %10 = vector.extract_strided_slice %9 {offsets = [0, 0], sizes = [8, 16], strides = [1, 1]} : vector<8x32xf32> to vector<8x16xf32>
    %11 = vector.extract_strided_slice %9 {offsets = [0, 16], sizes = [8, 16], strides = [1, 1]} : vector<8x32xf32> to vector<8x16xf32>
    %c0_8 = arith.constant 0 : index
    %c0_9 = arith.constant 0 : index
    %12 = vector.load %arg3[%c0_8, %c0_9] : memref<8x16xf32, #tpu.memory_space<vmem>>, vector<8x16xf32>
    %cst_10 = arith.constant 5.000000e-01 : f32
    %13 = vector.broadcast %cst_10 : f32 to vector<8x16xf32>
    %14 = arith.mulf %13, %11 : vector<8x16xf32>
    %15 = math.exp %14 : vector<8x16xf32>
    %16 = arith.mulf %12, %15 : vector<8x16xf32>
    %17 = arith.addf %10, %16 : vector<8x16xf32>
    %c0_11 = arith.constant 0 : index
    %c0_12 = arith.constant 0 : index
    %18 = vector.load %arg4[%c0_11, %c0_12] : memref<16x32xf32, #tpu.memory_space<vmem>>, vector<16x32xf32>
    %cst_13 = arith.constant dense<0.000000e+00> : vector<8x32xf32>
    %19 = tpu.matmul %17, %18, %cst_13 {dimension_numbers = #tpu.dot_dimension_numbers<[1], [0], [0], [1], [0, 0, 1, 1], [], []>} : vector<8x16xf32>, vector<16x32xf32>, vector<8x32xf32> -> vector<8x32xf32>
    %c0_14 = arith.constant 0 : index
    %c0_15 = arith.constant 0 : index
    %20 = vector.load %arg5[%c0_14, %c0_15] : memref<1x32xf32, #tpu.memory_space<vmem>>, vector<1x32xf32>
    %21 = vector.broadcast %20 : vector<1x32xf32> to vector<8x32xf32>
    %22 = arith.addf %19, %21 : vector<8x32xf32>
    %c0_16 = arith.constant 0 : index
    %c0_17 = arith.constant 0 : index
    %23 = vector.load %arg6[%c0_16, %c0_17] : memref<32x128xf32, #tpu.memory_space<vmem>>, vector<32x128xf32>
    %cst_18 = arith.constant dense<0.000000e+00> : vector<8x128xf32>
    %24 = tpu.matmul %22, %23, %cst_18 {dimension_numbers = #tpu.dot_dimension_numbers<[1], [0], [0], [1], [0, 0, 1, 1], [], []>} : vector<8x32xf32>, vector<32x128xf32>, vector<8x128xf32> -> vector<8x128xf32>
    %c0_19 = arith.constant 0 : index
    %c0_20 = arith.constant 0 : index
    %25 = vector.load %arg7[%c0_19, %c0_20] : memref<8x16xf32, #tpu.memory_space<vmem>>, vector<8x16xf32>
    tpu.vector_store %arg7[%c0_19, %c0_20], %10 {strides = array<i32>} : memref<8x16xf32, #tpu.memory_space<vmem>>, vector<8x16xf32>,
    %c0_21 = arith.constant 0 : index
    %c0_22 = arith.constant 0 : index
    %26 = vector.load %arg8[%c0_21, %c0_22] : memref<8x16xf32, #tpu.memory_space<vmem>>, vector<8x16xf32>
    tpu.vector_store %arg8[%c0_21, %c0_22], %11 {strides = array<i32>} : memref<8x16xf32, #tpu.memory_space<vmem>>, vector<8x16xf32>,
    %c0_23 = arith.constant 0 : index
    %c0_24 = arith.constant 0 : index
    %27 = vector.load %arg9[%c0_23, %c0_24] : memref<8x16xf32, #tpu.memory_space<vmem>>, vector<8x16xf32>
    tpu.vector_store %arg9[%c0_23, %c0_24], %17 {strides = array<i32>} : memref<8x16xf32, #tpu.memory_space<vmem>>, vector<8x16xf32>,
    %c0_25 = arith.constant 0 : index
    %c0_26 = arith.constant 0 : index
    %28 = vector.load %arg10[%c0_25, %c0_26] : memref<8x128xf32, #tpu.memory_space<vmem>>, vector<8x128xf32>
    tpu.vector_store %arg10[%c0_25, %c0_26], %24 {strides = array<i32>} : memref<8x128xf32, #tpu.memory_space<vmem>>, vector<8x128xf32>,
    return
  }
}

module attributes {stable_mosaic.version = 11 : i64} {
  func.func @_decoder_kernel(%arg0: memref<8x8x128xf32, #tpu.memory_space<vmem>>, %arg1: memref<8x128xf32, #tpu.memory_space<vmem>>, %arg2: memref<32x128xf32, #tpu.memory_space<vmem>>, %arg3: memref<32x128xf32, #tpu.memory_space<vmem>>, %arg4: memref<1x128xf32, #tpu.memory_space<vmem>>, %arg5: memref<8x8x128xf32, #tpu.memory_space<vmem>>) attributes {dimension_semantics = [], scalar_prefetch = 0 : i64, scratch_operands = 0 : i64, tpu.core_type = #tpu.core_type<tc>} {
    %c0 = arith.constant 0 : index
    %c0_0 = arith.constant 0 : index
    %0 = vector.load %arg2[%c0, %c0_0] : memref<32x128xf32, #tpu.memory_space<vmem>>, vector<32x128xf32>
    %c0_1 = arith.constant 0 : index
    %c0_2 = arith.constant 0 : index
    %1 = vector.load %arg3[%c0_1, %c0_2] : memref<32x128xf32, #tpu.memory_space<vmem>>, vector<32x128xf32>
    %c0_3 = arith.constant 0 : index
    %c0_4 = arith.constant 0 : index
    %2 = vector.load %arg4[%c0_3, %c0_4] : memref<1x128xf32, #tpu.memory_space<vmem>>, vector<1x128xf32>
    %c0_5 = arith.constant 0 : index
    %c0_6 = arith.constant 0 : index
    %3 = vector.load %arg1[%c0_5, %c0_6] : memref<8x128xf32, #tpu.memory_space<vmem>>, vector<8x128xf32>
    %cst = arith.constant 0.000000e+00 : f32
    %4 = vector.broadcast %cst : f32 to vector<8x32xf32>
    %cst_7 = arith.constant 0.000000e+00 : f32
    %5 = vector.broadcast %cst_7 : f32 to vector<8x32xf32>
    %c0_i32 = arith.constant 0 : i32
    %6 = arith.index_cast %c0_i32 : i32 to index
    %c0_8 = arith.constant 0 : index
    %c0_9 = arith.constant 0 : index
    %7 = vector.load %arg0[%6, %c0_8, %c0_9] : memref<8x8x128xf32, #tpu.memory_space<vmem>>, vector<1x8x128xf32>
    %8 = vector.shape_cast %7 : vector<1x8x128xf32> to vector<8x128xf32>
    %9 = arith.addf %8, %3 : vector<8x128xf32>
    %cst_10 = arith.constant dense<0.000000e+00> : vector<8x128xf32>
    %10 = tpu.matmul %4, %0, %cst_10 {dimension_numbers = #tpu.dot_dimension_numbers<[1], [0], [0], [1], [0, 0, 1, 1], [], []>} : vector<8x32xf32>, vector<32x128xf32>, vector<8x128xf32> -> vector<8x128xf32>
    %11 = arith.addf %9, %10 : vector<8x128xf32>
    %12 = vector.extract_strided_slice %11 {offsets = [0, 0], sizes = [8, 32], strides = [1, 1]} : vector<8x128xf32> to vector<8x32xf32>
    %13 = arith.negf %12 : vector<8x32xf32>
    %14 = math.exp %13 : vector<8x32xf32>
    %cst_11 = arith.constant 1.000000e+00 : f32
    %15 = vector.broadcast %cst_11 : f32 to vector<8x32xf32>
    %16 = arith.addf %15, %14 : vector<8x32xf32>
    %17 = arith.divf %15, %16 : vector<8x32xf32>
    %18 = vector.extract_strided_slice %11 {offsets = [0, 32], sizes = [8, 32], strides = [1, 1]} : vector<8x128xf32> to vector<8x32xf32>
    %19 = arith.negf %18 : vector<8x32xf32>
    %20 = math.exp %19 : vector<8x32xf32>
    %cst_12 = arith.constant 1.000000e+00 : f32
    %21 = vector.broadcast %cst_12 : f32 to vector<8x32xf32>
    %22 = arith.addf %21, %20 : vector<8x32xf32>
    %23 = arith.divf %21, %22 : vector<8x32xf32>
    %24 = vector.extract_strided_slice %11 {offsets = [0, 64], sizes = [8, 32], strides = [1, 1]} : vector<8x128xf32> to vector<8x32xf32>
    %25 = math.tanh %24 : vector<8x32xf32>
    %26 = vector.extract_strided_slice %11 {offsets = [0, 96], sizes = [8, 32], strides = [1, 1]} : vector<8x128xf32> to vector<8x32xf32>
    %27 = arith.negf %26 : vector<8x32xf32>
    %28 = math.exp %27 : vector<8x32xf32>
    %cst_13 = arith.constant 1.000000e+00 : f32
    %29 = vector.broadcast %cst_13 : f32 to vector<8x32xf32>
    %30 = arith.addf %29, %28 : vector<8x32xf32>
    %31 = arith.divf %29, %30 : vector<8x32xf32>
    %32 = arith.mulf %23, %5 : vector<8x32xf32>
    %33 = arith.mulf %17, %25 : vector<8x32xf32>
    %34 = arith.addf %32, %33 : vector<8x32xf32>
    %35 = math.tanh %34 : vector<8x32xf32>
    %36 = arith.mulf %31, %35 : vector<8x32xf32>
    %cst_14 = arith.constant dense<0.000000e+00> : vector<8x128xf32>
    %37 = tpu.matmul %36, %1, %cst_14 {dimension_numbers = #tpu.dot_dimension_numbers<[1], [0], [0], [1], [0, 0, 1, 1], [], []>} : vector<8x32xf32>, vector<32x128xf32>, vector<8x128xf32> -> vector<8x128xf32>
    %38 = vector.broadcast %2 : vector<1x128xf32> to vector<8x128xf32>
    %39 = arith.addf %37, %38 : vector<8x128xf32>
    %40 = arith.index_cast %c0_i32 : i32 to index
    %c0_15 = arith.constant 0 : index
    %c0_16 = arith.constant 0 : index
    %41 = vector.load %arg5[%40, %c0_15, %c0_16] : memref<8x8x128xf32, #tpu.memory_space<vmem>>, vector<1x8x128xf32>
    %42 = vector.shape_cast %41 : vector<1x8x128xf32> to vector<8x128xf32>
    %43 = vector.shape_cast %39 : vector<8x128xf32> to vector<1x8x128xf32>
    tpu.vector_store %arg5[%40, %c0_15, %c0_16], %43 {strides = array<i32>} : memref<8x8x128xf32, #tpu.memory_space<vmem>>, vector<1x8x128xf32>,
    %c1_i32 = arith.constant 1 : i32
    %44 = arith.index_cast %c1_i32 : i32 to index
    %c0_17 = arith.constant 0 : index
    %c0_18 = arith.constant 0 : index
    %45 = vector.load %arg0[%44, %c0_17, %c0_18] : memref<8x8x128xf32, #tpu.memory_space<vmem>>, vector<1x8x128xf32>
    %46 = vector.shape_cast %45 : vector<1x8x128xf32> to vector<8x128xf32>
    %47 = arith.addf %46, %3 : vector<8x128xf32>
    %cst_19 = arith.constant dense<0.000000e+00> : vector<8x128xf32>
    %48 = tpu.matmul %36, %0, %cst_19 {dimension_numbers = #tpu.dot_dimension_numbers<[1], [0], [0], [1], [0, 0, 1, 1], [], []>} : vector<8x32xf32>, vector<32x128xf32>, vector<8x128xf32> -> vector<8x128xf32>
    %49 = arith.addf %47, %48 : vector<8x128xf32>
    %50 = vector.extract_strided_slice %49 {offsets = [0, 0], sizes = [8, 32], strides = [1, 1]} : vector<8x128xf32> to vector<8x32xf32>
    %51 = arith.negf %50 : vector<8x32xf32>
    %52 = math.exp %51 : vector<8x32xf32>
    %cst_20 = arith.constant 1.000000e+00 : f32
    %53 = vector.broadcast %cst_20 : f32 to vector<8x32xf32>
    %54 = arith.addf %53, %52 : vector<8x32xf32>
    %55 = arith.divf %53, %54 : vector<8x32xf32>
    %56 = vector.extract_strided_slice %49 {offsets = [0, 32], sizes = [8, 32], strides = [1, 1]} : vector<8x128xf32> to vector<8x32xf32>
    %57 = arith.negf %56 : vector<8x32xf32>
    %58 = math.exp %57 : vector<8x32xf32>
    %cst_21 = arith.constant 1.000000e+00 : f32
    %59 = vector.broadcast %cst_21 : f32 to vector<8x32xf32>
    %60 = arith.addf %59, %58 : vector<8x32xf32>
    %61 = arith.divf %59, %60 : vector<8x32xf32>
    %62 = vector.extract_strided_slice %49 {offsets = [0, 64], sizes = [8, 32], strides = [1, 1]} : vector<8x128xf32> to vector<8x32xf32>
    %63 = math.tanh %62 : vector<8x32xf32>
    %64 = vector.extract_strided_slice %49 {offsets = [0, 96], sizes = [8, 32], strides = [1, 1]} : vector<8x128xf32> to vector<8x32xf32>
    %65 = arith.negf %64 : vector<8x32xf32>
    %66 = math.exp %65 : vector<8x32xf32>
    %cst_22 = arith.constant 1.000000e+00 : f32
    %67 = vector.broadcast %cst_22 : f32 to vector<8x32xf32>
    %68 = arith.addf %67, %66 : vector<8x32xf32>
    %69 = arith.divf %67, %68 : vector<8x32xf32>
    %70 = arith.mulf %61, %34 : vector<8x32xf32>
    %71 = arith.mulf %55, %63 : vector<8x32xf32>
    %72 = arith.addf %70, %71 : vector<8x32xf32>
    %73 = math.tanh %72 : vector<8x32xf32>
    %74 = arith.mulf %69, %73 : vector<8x32xf32>
    %cst_23 = arith.constant dense<0.000000e+00> : vector<8x128xf32>
    %75 = tpu.matmul %74, %1, %cst_23 {dimension_numbers = #tpu.dot_dimension_numbers<[1], [0], [0], [1], [0, 0, 1, 1], [], []>} : vector<8x32xf32>, vector<32x128xf32>, vector<8x128xf32> -> vector<8x128xf32>
    %76 = vector.broadcast %2 : vector<1x128xf32> to vector<8x128xf32>
    %77 = arith.addf %75, %76 : vector<8x128xf32>
    %78 = arith.index_cast %c1_i32 : i32 to index
    %c0_24 = arith.constant 0 : index
    %c0_25 = arith.constant 0 : index
    %79 = vector.load %arg5[%78, %c0_24, %c0_25] : memref<8x8x128xf32, #tpu.memory_space<vmem>>, vector<1x8x128xf32>
    %80 = vector.shape_cast %79 : vector<1x8x128xf32> to vector<8x128xf32>
    %81 = vector.shape_cast %77 : vector<8x128xf32> to vector<1x8x128xf32>
    tpu.vector_store %arg5[%78, %c0_24, %c0_25], %81 {strides = array<i32>} : memref<8x8x128xf32, #tpu.memory_space<vmem>>, vector<1x8x128xf32>,
    %c2_i32 = arith.constant 2 : i32
    %82 = arith.index_cast %c2_i32 : i32 to index
    %c0_26 = arith.constant 0 : index
    %c0_27 = arith.constant 0 : index
    %83 = vector.load %arg0[%82, %c0_26, %c0_27] : memref<8x8x128xf32, #tpu.memory_space<vmem>>, vector<1x8x128xf32>
    %84 = vector.shape_cast %83 : vector<1x8x128xf32> to vector<8x128xf32>
    %85 = arith.addf %84, %3 : vector<8x128xf32>
    %cst_28 = arith.constant dense<0.000000e+00> : vector<8x128xf32>
    %86 = tpu.matmul %74, %0, %cst_28 {dimension_numbers = #tpu.dot_dimension_numbers<[1], [0], [0], [1], [0, 0, 1, 1], [], []>} : vector<8x32xf32>, vector<32x128xf32>, vector<8x128xf32> -> vector<8x128xf32>
    %87 = arith.addf %85, %86 : vector<8x128xf32>
    %88 = vector.extract_strided_slice %87 {offsets = [0, 0], sizes = [8, 32], strides = [1, 1]} : vector<8x128xf32> to vector<8x32xf32>
    %89 = arith.negf %88 : vector<8x32xf32>
    %90 = math.exp %89 : vector<8x32xf32>
    %cst_29 = arith.constant 1.000000e+00 : f32
    %91 = vector.broadcast %cst_29 : f32 to vector<8x32xf32>
    %92 = arith.addf %91, %90 : vector<8x32xf32>
    %93 = arith.divf %91, %92 : vector<8x32xf32>
    %94 = vector.extract_strided_slice %87 {offsets = [0, 32], sizes = [8, 32], strides = [1, 1]} : vector<8x128xf32> to vector<8x32xf32>
    %95 = arith.negf %94 : vector<8x32xf32>
    %96 = math.exp %95 : vector<8x32xf32>
    %cst_30 = arith.constant 1.000000e+00 : f32
    %97 = vector.broadcast %cst_30 : f32 to vector<8x32xf32>
    %98 = arith.addf %97, %96 : vector<8x32xf32>
    %99 = arith.divf %97, %98 : vector<8x32xf32>
    %100 = vector.extract_strided_slice %87 {offsets = [0, 64], sizes = [8, 32], strides = [1, 1]} : vector<8x128xf32> to vector<8x32xf32>
    %101 = math.tanh %100 : vector<8x32xf32>
    %102 = vector.extract_strided_slice %87 {offsets = [0, 96], sizes = [8, 32], strides = [1, 1]} : vector<8x128xf32> to vector<8x32xf32>
    %103 = arith.negf %102 : vector<8x32xf32>
    %104 = math.exp %103 : vector<8x32xf32>
    %cst_31 = arith.constant 1.000000e+00 : f32
    %105 = vector.broadcast %cst_31 : f32 to vector<8x32xf32>
    %106 = arith.addf %105, %104 : vector<8x32xf32>
    %107 = arith.divf %105, %106 : vector<8x32xf32>
    %108 = arith.mulf %99, %72 : vector<8x32xf32>
    %109 = arith.mulf %93, %101 : vector<8x32xf32>
    %110 = arith.addf %108, %109 : vector<8x32xf32>
    %111 = math.tanh %110 : vector<8x32xf32>
    %112 = arith.mulf %107, %111 : vector<8x32xf32>
    %cst_32 = arith.constant dense<0.000000e+00> : vector<8x128xf32>
    %113 = tpu.matmul %112, %1, %cst_32 {dimension_numbers = #tpu.dot_dimension_numbers<[1], [0], [0], [1], [0, 0, 1, 1], [], []>} : vector<8x32xf32>, vector<32x128xf32>, vector<8x128xf32> -> vector<8x128xf32>
    %114 = vector.broadcast %2 : vector<1x128xf32> to vector<8x128xf32>
    %115 = arith.addf %113, %114 : vector<8x128xf32>
    %116 = arith.index_cast %c2_i32 : i32 to index
    %c0_33 = arith.constant 0 : index
    %c0_34 = arith.constant 0 : index
    %117 = vector.load %arg5[%116, %c0_33, %c0_34] : memref<8x8x128xf32, #tpu.memory_space<vmem>>, vector<1x8x128xf32>
    %118 = vector.shape_cast %117 : vector<1x8x128xf32> to vector<8x128xf32>
    %119 = vector.shape_cast %115 : vector<8x128xf32> to vector<1x8x128xf32>
    tpu.vector_store %arg5[%116, %c0_33, %c0_34], %119 {strides = array<i32>} : memref<8x8x128xf32, #tpu.memory_space<vmem>>, vector<1x8x128xf32>,
    %c3_i32 = arith.constant 3 : i32
    %120 = arith.index_cast %c3_i32 : i32 to index
    %c0_35 = arith.constant 0 : index
    %c0_36 = arith.constant 0 : index
    %121 = vector.load %arg0[%120, %c0_35, %c0_36] : memref<8x8x128xf32, #tpu.memory_space<vmem>>, vector<1x8x128xf32>
    %122 = vector.shape_cast %121 : vector<1x8x128xf32> to vector<8x128xf32>
    %123 = arith.addf %122, %3 : vector<8x128xf32>
    %cst_37 = arith.constant dense<0.000000e+00> : vector<8x128xf32>
    %124 = tpu.matmul %112, %0, %cst_37 {dimension_numbers = #tpu.dot_dimension_numbers<[1], [0], [0], [1], [0, 0, 1, 1], [], []>} : vector<8x32xf32>, vector<32x128xf32>, vector<8x128xf32> -> vector<8x128xf32>
    %125 = arith.addf %123, %124 : vector<8x128xf32>
    %126 = vector.extract_strided_slice %125 {offsets = [0, 0], sizes = [8, 32], strides = [1, 1]} : vector<8x128xf32> to vector<8x32xf32>
    %127 = arith.negf %126 : vector<8x32xf32>
    %128 = math.exp %127 : vector<8x32xf32>
    %cst_38 = arith.constant 1.000000e+00 : f32
    %129 = vector.broadcast %cst_38 : f32 to vector<8x32xf32>
    %130 = arith.addf %129, %128 : vector<8x32xf32>
    %131 = arith.divf %129, %130 : vector<8x32xf32>
    %132 = vector.extract_strided_slice %125 {offsets = [0, 32], sizes = [8, 32], strides = [1, 1]} : vector<8x128xf32> to vector<8x32xf32>
    %133 = arith.negf %132 : vector<8x32xf32>
    %134 = math.exp %133 : vector<8x32xf32>
    %cst_39 = arith.constant 1.000000e+00 : f32
    %135 = vector.broadcast %cst_39 : f32 to vector<8x32xf32>
    %136 = arith.addf %135, %134 : vector<8x32xf32>
    %137 = arith.divf %135, %136 : vector<8x32xf32>
    %138 = vector.extract_strided_slice %125 {offsets = [0, 64], sizes = [8, 32], strides = [1, 1]} : vector<8x128xf32> to vector<8x32xf32>
    %139 = math.tanh %138 : vector<8x32xf32>
    %140 = vector.extract_strided_slice %125 {offsets = [0, 96], sizes = [8, 32], strides = [1, 1]} : vector<8x128xf32> to vector<8x32xf32>
    %141 = arith.negf %140 : vector<8x32xf32>
    %142 = math.exp %141 : vector<8x32xf32>
    %cst_40 = arith.constant 1.000000e+00 : f32
    %143 = vector.broadcast %cst_40 : f32 to vector<8x32xf32>
    %144 = arith.addf %143, %142 : vector<8x32xf32>
    %145 = arith.divf %143, %144 : vector<8x32xf32>
    %146 = arith.mulf %137, %110 : vector<8x32xf32>
    %147 = arith.mulf %131, %139 : vector<8x32xf32>
    %148 = arith.addf %146, %147 : vector<8x32xf32>
    %149 = math.tanh %148 : vector<8x32xf32>
    %150 = arith.mulf %145, %149 : vector<8x32xf32>
    %cst_41 = arith.constant dense<0.000000e+00> : vector<8x128xf32>
    %151 = tpu.matmul %150, %1, %cst_41 {dimension_numbers = #tpu.dot_dimension_numbers<[1], [0], [0], [1], [0, 0, 1, 1], [], []>} : vector<8x32xf32>, vector<32x128xf32>, vector<8x128xf32> -> vector<8x128xf32>
    %152 = vector.broadcast %2 : vector<1x128xf32> to vector<8x128xf32>
    %153 = arith.addf %151, %152 : vector<8x128xf32>
    %154 = arith.index_cast %c3_i32 : i32 to index
    %c0_42 = arith.constant 0 : index
    %c0_43 = arith.constant 0 : index
    %155 = vector.load %arg5[%154, %c0_42, %c0_43] : memref<8x8x128xf32, #tpu.memory_space<vmem>>, vector<1x8x128xf32>
    %156 = vector.shape_cast %155 : vector<1x8x128xf32> to vector<8x128xf32>
    %157 = vector.shape_cast %153 : vector<8x128xf32> to vector<1x8x128xf32>
    tpu.vector_store %arg5[%154, %c0_42, %c0_43], %157 {strides = array<i32>} : memref<8x8x128xf32, #tpu.memory_space<vmem>>, vector<1x8x128xf32>,
    %c4_i32 = arith.constant 4 : i32
    %158 = arith.index_cast %c4_i32 : i32 to index
    %c0_44 = arith.constant 0 : index
    %c0_45 = arith.constant 0 : index
    %159 = vector.load %arg0[%158, %c0_44, %c0_45] : memref<8x8x128xf32, #tpu.memory_space<vmem>>, vector<1x8x128xf32>
    %160 = vector.shape_cast %159 : vector<1x8x128xf32> to vector<8x128xf32>
    %161 = arith.addf %160, %3 : vector<8x128xf32>
    %cst_46 = arith.constant dense<0.000000e+00> : vector<8x128xf32>
    %162 = tpu.matmul %150, %0, %cst_46 {dimension_numbers = #tpu.dot_dimension_numbers<[1], [0], [0], [1], [0, 0, 1, 1], [], []>} : vector<8x32xf32>, vector<32x128xf32>, vector<8x128xf32> -> vector<8x128xf32>
    %163 = arith.addf %161, %162 : vector<8x128xf32>
    %164 = vector.extract_strided_slice %163 {offsets = [0, 0], sizes = [8, 32], strides = [1, 1]} : vector<8x128xf32> to vector<8x32xf32>
    %165 = arith.negf %164 : vector<8x32xf32>
    %166 = math.exp %165 : vector<8x32xf32>
    %cst_47 = arith.constant 1.000000e+00 : f32
    %167 = vector.broadcast %cst_47 : f32 to vector<8x32xf32>
    %168 = arith.addf %167, %166 : vector<8x32xf32>
    %169 = arith.divf %167, %168 : vector<8x32xf32>
    %170 = vector.extract_strided_slice %163 {offsets = [0, 32], sizes = [8, 32], strides = [1, 1]} : vector<8x128xf32> to vector<8x32xf32>
    %171 = arith.negf %170 : vector<8x32xf32>
    %172 = math.exp %171 : vector<8x32xf32>
    %cst_48 = arith.constant 1.000000e+00 : f32
    %173 = vector.broadcast %cst_48 : f32 to vector<8x32xf32>
    %174 = arith.addf %173, %172 : vector<8x32xf32>
    %175 = arith.divf %173, %174 : vector<8x32xf32>
    %176 = vector.extract_strided_slice %163 {offsets = [0, 64], sizes = [8, 32], strides = [1, 1]} : vector<8x128xf32> to vector<8x32xf32>
    %177 = math.tanh %176 : vector<8x32xf32>
    %178 = vector.extract_strided_slice %163 {offsets = [0, 96], sizes = [8, 32], strides = [1, 1]} : vector<8x128xf32> to vector<8x32xf32>
    %179 = arith.negf %178 : vector<8x32xf32>
    %180 = math.exp %179 : vector<8x32xf32>
    %cst_49 = arith.constant 1.000000e+00 : f32
    %181 = vector.broadcast %cst_49 : f32 to vector<8x32xf32>
    %182 = arith.addf %181, %180 : vector<8x32xf32>
    %183 = arith.divf %181, %182 : vector<8x32xf32>
    %184 = arith.mulf %175, %148 : vector<8x32xf32>
    %185 = arith.mulf %169, %177 : vector<8x32xf32>
    %186 = arith.addf %184, %185 : vector<8x32xf32>
    %187 = math.tanh %186 : vector<8x32xf32>
    %188 = arith.mulf %183, %187 : vector<8x32xf32>
    %cst_50 = arith.constant dense<0.000000e+00> : vector<8x128xf32>
    %189 = tpu.matmul %188, %1, %cst_50 {dimension_numbers = #tpu.dot_dimension_numbers<[1], [0], [0], [1], [0, 0, 1, 1], [], []>} : vector<8x32xf32>, vector<32x128xf32>, vector<8x128xf32> -> vector<8x128xf32>
    %190 = vector.broadcast %2 : vector<1x128xf32> to vector<8x128xf32>
    %191 = arith.addf %189, %190 : vector<8x128xf32>
    %192 = arith.index_cast %c4_i32 : i32 to index
    %c0_51 = arith.constant 0 : index
    %c0_52 = arith.constant 0 : index
    %193 = vector.load %arg5[%192, %c0_51, %c0_52] : memref<8x8x128xf32, #tpu.memory_space<vmem>>, vector<1x8x128xf32>
    %194 = vector.shape_cast %193 : vector<1x8x128xf32> to vector<8x128xf32>
    %195 = vector.shape_cast %191 : vector<8x128xf32> to vector<1x8x128xf32>
    tpu.vector_store %arg5[%192, %c0_51, %c0_52], %195 {strides = array<i32>} : memref<8x8x128xf32, #tpu.memory_space<vmem>>, vector<1x8x128xf32>,
    %c5_i32 = arith.constant 5 : i32
    %196 = arith.index_cast %c5_i32 : i32 to index
    %c0_53 = arith.constant 0 : index
    %c0_54 = arith.constant 0 : index
    %197 = vector.load %arg0[%196, %c0_53, %c0_54] : memref<8x8x128xf32, #tpu.memory_space<vmem>>, vector<1x8x128xf32>
    %198 = vector.shape_cast %197 : vector<1x8x128xf32> to vector<8x128xf32>
    %199 = arith.addf %198, %3 : vector<8x128xf32>
    %cst_55 = arith.constant dense<0.000000e+00> : vector<8x128xf32>
    %200 = tpu.matmul %188, %0, %cst_55 {dimension_numbers = #tpu.dot_dimension_numbers<[1], [0], [0], [1], [0, 0, 1, 1], [], []>} : vector<8x32xf32>, vector<32x128xf32>, vector<8x128xf32> -> vector<8x128xf32>
    %201 = arith.addf %199, %200 : vector<8x128xf32>
    %202 = vector.extract_strided_slice %201 {offsets = [0, 0], sizes = [8, 32], strides = [1, 1]} : vector<8x128xf32> to vector<8x32xf32>
    %203 = arith.negf %202 : vector<8x32xf32>
    %204 = math.exp %203 : vector<8x32xf32>
    %cst_56 = arith.constant 1.000000e+00 : f32
    %205 = vector.broadcast %cst_56 : f32 to vector<8x32xf32>
    %206 = arith.addf %205, %204 : vector<8x32xf32>
    %207 = arith.divf %205, %206 : vector<8x32xf32>
    %208 = vector.extract_strided_slice %201 {offsets = [0, 32], sizes = [8, 32], strides = [1, 1]} : vector<8x128xf32> to vector<8x32xf32>
    %209 = arith.negf %208 : vector<8x32xf32>
    %210 = math.exp %209 : vector<8x32xf32>
    %cst_57 = arith.constant 1.000000e+00 : f32
    %211 = vector.broadcast %cst_57 : f32 to vector<8x32xf32>
    %212 = arith.addf %211, %210 : vector<8x32xf32>
    %213 = arith.divf %211, %212 : vector<8x32xf32>
    %214 = vector.extract_strided_slice %201 {offsets = [0, 64], sizes = [8, 32], strides = [1, 1]} : vector<8x128xf32> to vector<8x32xf32>
    %215 = math.tanh %214 : vector<8x32xf32>
    %216 = vector.extract_strided_slice %201 {offsets = [0, 96], sizes = [8, 32], strides = [1, 1]} : vector<8x128xf32> to vector<8x32xf32>
    %217 = arith.negf %216 : vector<8x32xf32>
    %218 = math.exp %217 : vector<8x32xf32>
    %cst_58 = arith.constant 1.000000e+00 : f32
    %219 = vector.broadcast %cst_58 : f32 to vector<8x32xf32>
    %220 = arith.addf %219, %218 : vector<8x32xf32>
    %221 = arith.divf %219, %220 : vector<8x32xf32>
    %222 = arith.mulf %213, %186 : vector<8x32xf32>
    %223 = arith.mulf %207, %215 : vector<8x32xf32>
    %224 = arith.addf %222, %223 : vector<8x32xf32>
    %225 = math.tanh %224 : vector<8x32xf32>
    %226 = arith.mulf %221, %225 : vector<8x32xf32>
    %cst_59 = arith.constant dense<0.000000e+00> : vector<8x128xf32>
    %227 = tpu.matmul %226, %1, %cst_59 {dimension_numbers = #tpu.dot_dimension_numbers<[1], [0], [0], [1], [0, 0, 1, 1], [], []>} : vector<8x32xf32>, vector<32x128xf32>, vector<8x128xf32> -> vector<8x128xf32>
    %228 = vector.broadcast %2 : vector<1x128xf32> to vector<8x128xf32>
    %229 = arith.addf %227, %228 : vector<8x128xf32>
    %230 = arith.index_cast %c5_i32 : i32 to index
    %c0_60 = arith.constant 0 : index
    %c0_61 = arith.constant 0 : index
    %231 = vector.load %arg5[%230, %c0_60, %c0_61] : memref<8x8x128xf32, #tpu.memory_space<vmem>>, vector<1x8x128xf32>
    %232 = vector.shape_cast %231 : vector<1x8x128xf32> to vector<8x128xf32>
    %233 = vector.shape_cast %229 : vector<8x128xf32> to vector<1x8x128xf32>
    tpu.vector_store %arg5[%230, %c0_60, %c0_61], %233 {strides = array<i32>} : memref<8x8x128xf32, #tpu.memory_space<vmem>>, vector<1x8x128xf32>,
    %c6_i32 = arith.constant 6 : i32
    %234 = arith.index_cast %c6_i32 : i32 to index
    %c0_62 = arith.constant 0 : index
    %c0_63 = arith.constant 0 : index
    %235 = vector.load %arg0[%234, %c0_62, %c0_63] : memref<8x8x128xf32, #tpu.memory_space<vmem>>, vector<1x8x128xf32>
    %236 = vector.shape_cast %235 : vector<1x8x128xf32> to vector<8x128xf32>
    %237 = arith.addf %236, %3 : vector<8x128xf32>
    %cst_64 = arith.constant dense<0.000000e+00> : vector<8x128xf32>
    %238 = tpu.matmul %226, %0, %cst_64 {dimension_numbers = #tpu.dot_dimension_numbers<[1], [0], [0], [1], [0, 0, 1, 1], [], []>} : vector<8x32xf32>, vector<32x128xf32>, vector<8x128xf32> -> vector<8x128xf32>
    %239 = arith.addf %237, %238 : vector<8x128xf32>
    %240 = vector.extract_strided_slice %239 {offsets = [0, 0], sizes = [8, 32], strides = [1, 1]} : vector<8x128xf32> to vector<8x32xf32>
    %241 = arith.negf %240 : vector<8x32xf32>
    %242 = math.exp %241 : vector<8x32xf32>
    %cst_65 = arith.constant 1.000000e+00 : f32
    %243 = vector.broadcast %cst_65 : f32 to vector<8x32xf32>
    %244 = arith.addf %243, %242 : vector<8x32xf32>
    %245 = arith.divf %243, %244 : vector<8x32xf32>
    %246 = vector.extract_strided_slice %239 {offsets = [0, 32], sizes = [8, 32], strides = [1, 1]} : vector<8x128xf32> to vector<8x32xf32>
    %247 = arith.negf %246 : vector<8x32xf32>
    %248 = math.exp %247 : vector<8x32xf32>
    %cst_66 = arith.constant 1.000000e+00 : f32
    %249 = vector.broadcast %cst_66 : f32 to vector<8x32xf32>
    %250 = arith.addf %249, %248 : vector<8x32xf32>
    %251 = arith.divf %249, %250 : vector<8x32xf32>
    %252 = vector.extract_strided_slice %239 {offsets = [0, 64], sizes = [8, 32], strides = [1, 1]} : vector<8x128xf32> to vector<8x32xf32>
    %253 = math.tanh %252 : vector<8x32xf32>
    %254 = vector.extract_strided_slice %239 {offsets = [0, 96], sizes = [8, 32], strides = [1, 1]} : vector<8x128xf32> to vector<8x32xf32>
    %255 = arith.negf %254 : vector<8x32xf32>
    %256 = math.exp %255 : vector<8x32xf32>
    %cst_67 = arith.constant 1.000000e+00 : f32
    %257 = vector.broadcast %cst_67 : f32 to vector<8x32xf32>
    %258 = arith.addf %257, %256 : vector<8x32xf32>
    %259 = arith.divf %257, %258 : vector<8x32xf32>
    %260 = arith.mulf %251, %224 : vector<8x32xf32>
    %261 = arith.mulf %245, %253 : vector<8x32xf32>
    %262 = arith.addf %260, %261 : vector<8x32xf32>
    %263 = math.tanh %262 : vector<8x32xf32>
    %264 = arith.mulf %259, %263 : vector<8x32xf32>
    %cst_68 = arith.constant dense<0.000000e+00> : vector<8x128xf32>
    %265 = tpu.matmul %264, %1, %cst_68 {dimension_numbers = #tpu.dot_dimension_numbers<[1], [0], [0], [1], [0, 0, 1, 1], [], []>} : vector<8x32xf32>, vector<32x128xf32>, vector<8x128xf32> -> vector<8x128xf32>
    %266 = vector.broadcast %2 : vector<1x128xf32> to vector<8x128xf32>
    %267 = arith.addf %265, %266 : vector<8x128xf32>
    %268 = arith.index_cast %c6_i32 : i32 to index
    %c0_69 = arith.constant 0 : index
    %c0_70 = arith.constant 0 : index
    %269 = vector.load %arg5[%268, %c0_69, %c0_70] : memref<8x8x128xf32, #tpu.memory_space<vmem>>, vector<1x8x128xf32>
    %270 = vector.shape_cast %269 : vector<1x8x128xf32> to vector<8x128xf32>
    %271 = vector.shape_cast %267 : vector<8x128xf32> to vector<1x8x128xf32>
    tpu.vector_store %arg5[%268, %c0_69, %c0_70], %271 {strides = array<i32>} : memref<8x8x128xf32, #tpu.memory_space<vmem>>, vector<1x8x128xf32>,
    %c7_i32 = arith.constant 7 : i32
    %272 = arith.index_cast %c7_i32 : i32 to index
    %c0_71 = arith.constant 0 : index
    %c0_72 = arith.constant 0 : index
    %273 = vector.load %arg0[%272, %c0_71, %c0_72] : memref<8x8x128xf32, #tpu.memory_space<vmem>>, vector<1x8x128xf32>
    %274 = vector.shape_cast %273 : vector<1x8x128xf32> to vector<8x128xf32>
    %275 = arith.addf %274, %3 : vector<8x128xf32>
    %cst_73 = arith.constant dense<0.000000e+00> : vector<8x128xf32>
    %276 = tpu.matmul %264, %0, %cst_73 {dimension_numbers = #tpu.dot_dimension_numbers<[1], [0], [0], [1], [0, 0, 1, 1], [], []>} : vector<8x32xf32>, vector<32x128xf32>, vector<8x128xf32> -> vector<8x128xf32>
    %277 = arith.addf %275, %276 : vector<8x128xf32>
    %278 = vector.extract_strided_slice %277 {offsets = [0, 0], sizes = [8, 32], strides = [1, 1]} : vector<8x128xf32> to vector<8x32xf32>
    %279 = arith.negf %278 : vector<8x32xf32>
    %280 = math.exp %279 : vector<8x32xf32>
    %cst_74 = arith.constant 1.000000e+00 : f32
    %281 = vector.broadcast %cst_74 : f32 to vector<8x32xf32>
    %282 = arith.addf %281, %280 : vector<8x32xf32>
    %283 = arith.divf %281, %282 : vector<8x32xf32>
    %284 = vector.extract_strided_slice %277 {offsets = [0, 32], sizes = [8, 32], strides = [1, 1]} : vector<8x128xf32> to vector<8x32xf32>
    %285 = arith.negf %284 : vector<8x32xf32>
    %286 = math.exp %285 : vector<8x32xf32>
    %cst_75 = arith.constant 1.000000e+00 : f32
    %287 = vector.broadcast %cst_75 : f32 to vector<8x32xf32>
    %288 = arith.addf %287, %286 : vector<8x32xf32>
    %289 = arith.divf %287, %288 : vector<8x32xf32>
    %290 = vector.extract_strided_slice %277 {offsets = [0, 64], sizes = [8, 32], strides = [1, 1]} : vector<8x128xf32> to vector<8x32xf32>
    %291 = math.tanh %290 : vector<8x32xf32>
    %292 = vector.extract_strided_slice %277 {offsets = [0, 96], sizes = [8, 32], strides = [1, 1]} : vector<8x128xf32> to vector<8x32xf32>
    %293 = arith.negf %292 : vector<8x32xf32>
    %294 = math.exp %293 : vector<8x32xf32>
    %cst_76 = arith.constant 1.000000e+00 : f32
    %295 = vector.broadcast %cst_76 : f32 to vector<8x32xf32>
    %296 = arith.addf %295, %294 : vector<8x32xf32>
    %297 = arith.divf %295, %296 : vector<8x32xf32>
    %298 = arith.mulf %289, %262 : vector<8x32xf32>
    %299 = arith.mulf %283, %291 : vector<8x32xf32>
    %300 = arith.addf %298, %299 : vector<8x32xf32>
    %301 = math.tanh %300 : vector<8x32xf32>
    %302 = arith.mulf %297, %301 : vector<8x32xf32>
    %cst_77 = arith.constant dense<0.000000e+00> : vector<8x128xf32>
    %303 = tpu.matmul %302, %1, %cst_77 {dimension_numbers = #tpu.dot_dimension_numbers<[1], [0], [0], [1], [0, 0, 1, 1], [], []>} : vector<8x32xf32>, vector<32x128xf32>, vector<8x128xf32> -> vector<8x128xf32>
    %304 = vector.broadcast %2 : vector<1x128xf32> to vector<8x128xf32>
    %305 = arith.addf %303, %304 : vector<8x128xf32>
    %306 = arith.index_cast %c7_i32 : i32 to index
    %c0_78 = arith.constant 0 : index
    %c0_79 = arith.constant 0 : index
    %307 = vector.load %arg5[%306, %c0_78, %c0_79] : memref<8x8x128xf32, #tpu.memory_space<vmem>>, vector<1x8x128xf32>
    %308 = vector.shape_cast %307 : vector<1x8x128xf32> to vector<8x128xf32>
    %309 = vector.shape_cast %305 : vector<8x128xf32> to vector<1x8x128xf32>
    tpu.vector_store %arg5[%306, %c0_78, %c0_79], %309 {strides = array<i32>} : memref<8x8x128xf32, #tpu.memory_space<vmem>>, vector<1x8x128xf32>,
    %c8_i32 = arith.constant 8 : i32
    return
  }
}

</mosaic_0001>

<bundles_post_ra>
// kernel: dae_forward.4
= control target key start
LH: loop header
LB: loop body
LE: loop exit
PB: predicated region body
PF: predicated region fallthrough
CT: control target
= control target key end

     0   :  { %v391_v3 = vmov 0.0   ;;  %vm51_vm0 = vcmask 261120   ;;  %v36_v27 = vlaneseq  ;;  %s583_s1 = inlined_call_operand.vmem [shape: f32[32,384], index: 1, kind: input, shape index: {}]   ;;  %s584_s0 = inlined_call_operand.vmem [shape: f32[64,32], index: 0, kind: input, shape index: {}]   ;;  %s585_s2 = inlined_call_operand.vmem [shape: f32[1,384], index: 2, kind: input, shape index: {}]   ;;  %s586_s3 = inlined_call_operand.vmem [shape: f32[64,384], index: 3, kind: output, shape index: {}]  }
   0x1   :  { %v23_v0 = vld [vmem:[%s583_s1 + $0x8] sm:$0xff]  ;;  %v26_v1 = vld [vmem:[%s583_s1 + $0x20] sm:$0xff]  ;;  %140 = vmatprep.mubr.f32.mxu0 %v391_v3  ;;  %176 = vmatprep.mubr.f32.mxu1 %v391_v3  ;;  %v25_v5 = vld [vmem:[%s583_s1 + $0x18] sm:$0xff] }
   0x2   :  { %v22_v2 = vld [vmem:[%s583_s1] sm:$0xff]  ;;  %v370_v4 = vpack.c.bf16 %v26_v1, %v23_v0  ;;  %v29_v6 = vld [vmem:[%s583_s1 + $0x38] sm:$0xff]  ;;  %v32_v7 = vld [vmem:[%s583_s1 + $0x50] sm:$0xff]  ;;  %v37_v28 = vshrl.u32 %v36_v27, 7 }
   0x3   :  { %v372_v8 = vpack.c.bf16 %v25_v5, %v22_v2  ;;  %v374_v9 = vpack.c.bf16 %v32_v7, %v29_v6  ;;  %v28_v10 = vld [vmem:[%s583_s1 + $0x30] sm:$0xff]  ;;  %v31_v11 = vld [vmem:[%s583_s1 + $0x48] sm:$0xff]  ;;  %v30_v16 = vld [vmem:[%s583_s1 + $0x40] sm:$0xff] }
   0x4   :  { %371 = vmatprep.subr.bf16.mxu0 %v370_v4  ;;  %386 = vmatprep.subr.bf16.mxu1 %v370_v4  ;;  %v24_v12 = vld [vmem:[%s583_s1 + $0x10] sm:$0xff]  ;;  %v27_v13 = vld [vmem:[%s583_s1 + $0x28] sm:$0xff]  ;;  %v376_v14 = vpack.c.bf16 %v31_v11, %v28_v10  ;;  %v33_v17 = vld [vmem:[%s583_s1 + $0x58] sm:$0xff]  ;;  %v38_v29 = vsub.s32 0, %v37_v28  ;;  %v42_v31 = vsub.s32 1, %v37_v28  ;;  %v46_v40 = vsub.s32 2, %v37_v28 }
   0x5   :  { %373 = vmatpush1.bf16.msra.mxu0 %v372_v8  ;;  %388 = vmatpush1.bf16.msra.mxu1 %v372_v8  ;;  %v378_v15 = vpack.c.bf16 %v27_v13, %v24_v12  ;;  %v14_v18 = vld [vmem:[%s584_s0] sm:$0xff]  ;;  %v20_v19 = vld [vmem:[%s584_s0 + $0x30] sm:$0xff]  ;;  %v382_v20 = vpack.c.bf16 %v33_v17, %v30_v16  ;;  %v15_v21 = vld [vmem:[%s584_s0 + $0x8] sm:$0xff] }
   0x6   :  { %375 = vmatprep.subr.bf16.mxu0 %v374_v9  ;;  %387 = vmatprep.subr.bf16.mxu1 %v374_v9  ;;  %v21_v22 = vld [vmem:[%s584_s0 + $0x38] sm:$0xff]  ;;  %v16_v23 = vld [vmem:[%s584_s0 + $0x10] sm:$0xff]  ;;  %v18_v25 = vld [vmem:[%s584_s0 + $0x20] sm:$0xff] }
   0x7   :  { %v17_v24 = vld [vmem:[%s584_s0 + $0x18] sm:$0xff]  ;;  %v19_v26 = vld [vmem:[%s584_s0 + $0x28] sm:$0xff]  ;;  %v34_v30 = vld [vmem:[%s585_s2] sm:$0x7] }
   0x8   :  { %v491_v32 = vrot.slane %v34_v30, %v38_v29  ;;  %v493_v33 = vrot.slane %v34_v30, %v42_v31  ;;  %v47_v49 = vrot.slane %v34_v30, %v46_v40 }
   0x9   :  { %377 = vmatpush1.bf16.msra.mxu0 %v376_v14  ;;  %389 = vmatpush1.bf16.msra.mxu1 %v376_v14 }
   0xa   :  { %379 = vmatprep.subr.bf16.mxu1 %v378_v15 }
   0xc   :  { %322 = vmatmul.mubr.msk.f32.vlgmr.msra.gmra.mrb[0].mxu0 %vm51_vm0, %v14_v18  ;;  %328 = vmatmul.mubr.msk.f32.vlgmr.msra.gmra.mrb[0].mxu1 %vm51_vm0, %v20_v19 }
   0xd   :  { %381 = vmatpush3.bf16.msra.mxu1 %v378_v15  ;;  %146 = vmatprep.mubr.f32.mxu0 %v391_v3 }
   0xe   :  { %182 = vmatprep.mubr.f32.mxu1 %v391_v3  ;;  %383 = vmatprep.subr.bf16.mxu1 %v382_v20 }
  0x10   :  { %323 = vmatmul.mubr.msk.f32.gmra.mrb[2].mxu0 %vm51_vm0, %v15_v21  ;;  %329 = vmatmul.mubr.msk.f32.gmra.mrb[2].mxu1 %vm51_vm0, %v21_v22 }
  0x11   :  { %385 = vmatpush3.bf16.msra.mxu1 %v382_v20  ;;  %152 = vmatprep.mubr.f32.mxu0 %v391_v3 }
  0x12   :  { %358 = vmatprep.mubr.msk.f32.mxu1 %vm51_vm0, %v14_v18 }
  0x14   :  { %324 = vmatmul.mubr.msk.f32.gmra.mrb[4].mxu0 %vm51_vm0, %v16_v23  ;;  %359 = vmatmul.mubr.msk.f32.vlgmr.msra.gmra.mrb[4].mxu1 %vm51_vm0, %v15_v21 }
  0x15   :  { %158 = vmatprep.mubr.f32.mxu0 %v391_v3  ;;  %361 = vmatprep.mubr.msk.f32.mxu1 %vm51_vm0, %v16_v23 }
  0x18   :  { %325 = vmatmul.mubr.msk.f32.gmra.mrb[6].mxu0 %vm51_vm0, %v17_v24  ;;  %362 = vmatmul.mubr.msk.f32.gmra.mrb[6].mxu1 %vm51_vm0, %v17_v24 }
  0x19   :  { %164 = vmatprep.mubr.f32.mxu0 %v391_v3  ;;  %364 = vmatprep.mubr.msk.f32.mxu1 %vm51_vm0, %v18_v25 }
  0x1c   :  { %326 = vmatmul.mubr.msk.f32.gmra.mrb[8].mxu0 %vm51_vm0, %v18_v25  ;;  %365 = vmatmul.mubr.msk.f32.gmra.mrb[8].mxu1 %vm51_vm0, %v19_v26 }
  0x1d   :  { %170 = vmatprep.mubr.f32.mxu0 %v391_v3  ;;  %367 = vmatprep.mubr.msk.f32.mxu1 %vm51_vm0, %v20_v19 }
  0x20   :  { %327 = vmatmul.mubr.msk.f32.gmra.mrb[10].mxu0 %vm51_vm0, %v19_v26  ;;  %368 = vmatmul.mubr.msk.f32.gmra.mrb[10].mxu1 %vm51_vm0, %v21_v22 }
  0xdf   :  { %v142_v34 = vpop.f32.mrb[0].mxu0  ;;  %v178_v35 = vpop.f32.mrb[0].mxu1 }
  0xe0   :  { %v143_v36 = vadd.f32 %v142_v34, %v491_v32  ;;  %v179_v37 = vadd.f32 %v178_v35, %v491_v32  ;;  %v144_v38 = vpop.f32.mrb[1].mxu0  ;;  %v180_v39 = vpop.f32.mrb[1].mxu1 }
  0xe1   :  { %v145_v41 = vadd.f32 %v144_v38, %v493_v33  ;;  %v181_v42 = vadd.f32 %v180_v39, %v493_v33 }
  0xe2   :  { %294 = vst [vmem:[%s586_s3] sm:$0xff] %v143_v36  ;;  %312 = vst [vmem:[%s586_s3 + $0x90] sm:$0xff] %v179_v37 }
  0xe3   :  { %295 = vst [vmem:[%s586_s3 + $0x8] sm:$0xff] %v145_v41  ;;  %313 = vst [vmem:[%s586_s3 + $0x98] sm:$0xff] %v181_v42  ;;  %v148_v43 = vpop.f32.mrb[2].mxu0  ;;  %v184_v44 = vpop.f32.mrb[2].mxu1 }
  0xe4   :  { %v149_v45 = vadd.f32 %v148_v43, %v491_v32  ;;  %v185_v46 = vadd.f32 %v184_v44, %v491_v32  ;;  %v150_v47 = vpop.f32.mrb[3].mxu0  ;;  %v186_v48 = vpop.f32.mrb[3].mxu1 }
  0xe5   :  { %v151_v50 = vadd.f32 %v150_v47, %v493_v33  ;;  %v187_v51 = vadd.f32 %v186_v48, %v493_v33 }
  0xe6   :  { %297 = vst [vmem:[%s586_s3 + $0x18] sm:$0xff] %v149_v45  ;;  %315 = vst [vmem:[%s586_s3 + $0xa8] sm:$0xff] %v185_v46 }
  0xe7   :  { %298 = vst [vmem:[%s586_s3 + $0x20] sm:$0xff] %v151_v50  ;;  %316 = vst [vmem:[%s586_s3 + $0xb0] sm:$0xff] %v187_v51  ;;  %v154_v52 = vpop.f32.mrb[4].mxu0  ;;  %v360_v53 = vpop.f32.mrb[4].mxu1 }
  0xe8   :  { %v155_v54 = vadd.f32 %v154_v52, %v491_v32  ;;  %v261_v55 = vadd.f32 %v360_v53, %v47_v49  ;;  %v156_v56 = vpop.f32.mrb[5].mxu0  ;;  %v255_v57 = vpop.f32.mrb[5].mxu1 }
  0xe9   :  { %v157_v58 = vadd.f32 %v156_v56, %v493_v33  ;;  %v256_v59 = vadd.f32 %v255_v57, %v47_v49 }
  0xea   :  { %300 = vst [vmem:[%s586_s3 + $0x30] sm:$0xff] %v155_v54  ;;  %299 = vst [vmem:[%s586_s3 + $0x28] sm:$0xff] %v261_v55 }
  0xeb   :  { %301 = vst [vmem:[%s586_s3 + $0x38] sm:$0xff] %v157_v58  ;;  %296 = vst [vmem:[%s586_s3 + $0x10] sm:$0xff] %v256_v59  ;;  %v160_v60 = vpop.f32.mrb[6].mxu0  ;;  %v363_v61 = vpop.f32.mrb[6].mxu1 }
  0xec   :  { %v161_v62 = vadd.f32 %v160_v60, %v491_v32  ;;  %v271_v63 = vadd.f32 %v363_v61, %v47_v49  ;;  %v162_v0 = vpop.f32.mrb[7].mxu0  ;;  %v265_v1 = vpop.f32.mrb[7].mxu1 }
  0xed   :  { %v163_v2 = vadd.f32 %v162_v0, %v493_v33  ;;  %v266_v3 = vadd.f32 %v265_v1, %v47_v49 }
  0xee   :  { %303 = vst [vmem:[%s586_s3 + $0x48] sm:$0xff] %v161_v62  ;;  %305 = vst [vmem:[%s586_s3 + $0x58] sm:$0xff] %v271_v63 }
  0xef   :  { %304 = vst [vmem:[%s586_s3 + $0x50] sm:$0xff] %v163_v2  ;;  %302 = vst [vmem:[%s586_s3 + $0x40] sm:$0xff] %v266_v3  ;;  %v166_v4 = vpop.f32.mrb[8].mxu0  ;;  %v366_v5 = vpop.f32.mrb[8].mxu1 }
  0xf0   :  { %v167_v6 = vadd.f32 %v166_v4, %v491_v32  ;;  %v281_v7 = vadd.f32 %v366_v5, %v47_v49  ;;  %v168_v8 = vpop.f32.mrb[9].mxu0  ;;  %v275_v9 = vpop.f32.mrb[9].mxu1 }
  0xf1   :  { %v169_v10 = vadd.f32 %v168_v8, %v493_v33  ;;  %v276_v11 = vadd.f32 %v275_v9, %v47_v49 }
  0xf2   :  { %306 = vst [vmem:[%s586_s3 + $0x60] sm:$0xff] %v167_v6  ;;  %311 = vst [vmem:[%s586_s3 + $0x88] sm:$0xff] %v281_v7 }
  0xf3   :  { %307 = vst [vmem:[%s586_s3 + $0x68] sm:$0xff] %v169_v10  ;;  %308 = vst [vmem:[%s586_s3 + $0x70] sm:$0xff] %v276_v11  ;;  %v172_v12 = vpop.f32.mrb[10].mxu0  ;;  %v369_v13 = vpop.f32.mrb[10].mxu1 }
  0xf4   :  { %v173_v14 = vadd.f32 %v172_v12, %v491_v32  ;;  %v291_v15 = vadd.f32 %v369_v13, %v47_v49  ;;  %v174_v16 = vpop.f32.mrb[11].mxu0  ;;  %v285_v17 = vpop.f32.mrb[11].mxu1 }
  0xf5   :  { %v175_v18 = vadd.f32 %v174_v16, %v493_v33  ;;  %v286_v19 = vadd.f32 %v285_v17, %v47_v49 }
  0xf6   :  { %309 = vst [vmem:[%s586_s3 + $0x78] sm:$0xff] %v173_v14  ;;  %317 = vst [vmem:[%s586_s3 + $0xb8] sm:$0xff] %v291_v15 }
  0xf7   :  { %310 = vst [vmem:[%s586_s3 + $0x80] sm:$0xff] %v175_v18  ;;  %314 = vst [vmem:[%s586_s3 + $0xa0] sm:$0xff] %v286_v19 }

// kernel: dae_forward.6
= control target key start
LH: loop header
LB: loop body
LE: loop exit
PB: predicated region body
PF: predicated region fallthrough
CT: control target
= control target key end

     0   :  { %16 = vsyncpa [#allocation3], 0  ;;  %s514_s19 = smov 32   ;;  %v515_v3 = vmov 0.0|0.0   ;;  %vm516_vm0 = vmmov 0   ;;  %v517_v7 = vmov 0.0   ;;  %s682_s0 = inlined_call_operand.vmem [shape: f32[2,8,32], index: 0, kind: input, shape index: {}]   ;;  %s683_s1 = inlined_call_operand.vmem [shape: f32[64,32], index: 1, kind: input, shape index: {}]   ;;  %s684_s2 = inlined_call_operand.vmem [shape: f32[1,32], index: 2, kind: input, shape index: {}]   ;;  %s685_s3 = inlined_call_operand.vmem [shape: f32[8,16], index: 3, kind: input, shape index: {}]   ;;  %s686_s4 = inlined_call_operand.vmem [shape: f32[16,32], index: 4, kind: input, shape index: {}]   ;;  %s687_s5 = inlined_call_operand.vmem [shape: f32[1,32], index: 5, kind: input, shape index: {}]   ;;  %s688_s6 = inlined_call_operand.vmem [shape: f32[32,128], index: 6, kind: input, shape index: {}]   ;;  %s689_s7 = inlined_call_operand.hbm [shape: f32[8,16], index: 7, kind: output, shape index: {0}]   ;;  %s690_s8 = inlined_call_operand.hbm [shape: f32[8,16], index: 8, kind: output, shape index: {1}]   ;;  %s691_s9 = inlined_call_operand.hbm [shape: f32[8,16], index: 9, kind: output, shape index: {2}]   ;;  %s692_s10 = inlined_call_operand.vmem [shape: f32[8,128], index: 10, kind: output, shape index: {3}]  }
   0x1   :  { %v353_v0 = vld [vmem:[%s682_s0 + $0x8] sm:$0xff]  ;;  %v41_v1 = vld [vmem:[%s683_s1] sm:$0xff]  ;;  %413 = vmatprep.subr.bf16.mxu0 %v515_v3  ;;  %v43_v5 = vld [vmem:[%s683_s1 + $0x10] sm:$0xff]  ;;  %392 = vmatprep.mubr.msk.f32.mxu0 %vm516_vm0, %v517_v7 }
   0x2   :  { %v42_v2 = vld [vmem:[%s683_s1 + $0x8] sm:$0xff]  ;;  %36 = vrot.lane.b32.xlu0 %v353_v0, %s514_s19  ;;  %v44_v6 = vld [vmem:[%s683_s1 + $0x18] sm:$0xff]  ;;  %425 = vmatprep.subr.bf16.mxu1 %v515_v3 }
   0x3   :  { %v414_v4 = vpack.c.bf16 %v42_v2, %v41_v1  ;;  %v417_v8 = vpack.c.bf16 %v44_v6, %v43_v5  ;;  %399 = vmatprep.mubr.msk.f32.mxu1 %vm516_vm0, %v517_v7 }
   0x5   :  { %415 = vmatpush3.bf16.msra.mxu0 %v414_v4 }
   0x6   :  { %17 = vsyncpa [#allocation5], 0  ;;  %416 = vmatprep.subr.bf16.mxu0 %v515_v3  ;;  %v45_v9 = vld [vmem:[%s683_s1 + $0x20] sm:$0xff]  ;;  %v46_v10 = vld [vmem:[%s683_s1 + $0x28] sm:$0xff]  ;;  %vm39_vm1 = vcmask 261120   ;;  %vm56_vm2 = vcmask 523264  }
   0x7   :  { %v420_v11 = vpack.c.bf16 %v46_v10, %v45_v9  ;;  %v47_v12 = vld [vmem:[%s683_s1 + $0x30] sm:$0xff]  ;;  %v48_v13 = vld [vmem:[%s683_s1 + $0x38] sm:$0xff]  ;;  %v32_v15 = vld [vmem:[%s682_s0] sm:$0xff]  ;;  %vm149_vm3 = vcmask 130048   ;;  %s518_s1 = smov 112   ;;  %s519_s28 = smov [#allocation4]  }
   0x8   :  { %v423_v14 = vpack.c.bf16 %v48_v13, %v47_v12  ;;  %v354_v18 = vld [vmem:[%s684_s2] ss:$0 sm:$0xff]  ;;  %v141_v24 = vld [vmem:[%s686_s4 + $0x8] sm:$0xff]  ;;  %v225_v36 = vld [vmem:[%s688_s6 + $0x10] sm:$0xff]  ;;  %s324_s29 = sshll.u32 %s519_s28, 4  ;;  %s520_s30 = smov [#allocation2]   ;;  %s325_s29 = int_to_ptr.vmem [resolvable:$true] %s324_s29 }
   0x9   :  { %418 = vmatpush3.bf16.msra.mxu0 %v417_v8  ;;  %v140_v23 = vld [vmem:[%s686_s4] sm:$0xff]  ;;  %v224_v31 = vld [vmem:[%s688_s6 + $0x8] sm:$0xff]  ;;  %v226_v37 = vld [vmem:[%s688_s6 + $0x18] sm:$0xff]  ;;  %s314_s11 = sshll.u32 %s520_s30, 4  ;;  %s444_s12 = scalar_lea.vmem %s325_s29, 128  ;;  %s315_s11 = int_to_ptr.vmem [resolvable:$true] %s314_s11 }
   0xa   :  { %419 = vmatprep.subr.bf16.mxu0 %v515_v3  ;;  %v426_v25 = vpack.c.bf16 %v141_v24, %v140_v23  ;;  %v130_v29 = vld [vmem:[%s685_s3] sm:$0xff]  ;;  %v432_v38 = vpack.c.bf16 %v226_v37, %v225_v36  ;;  %p445_p0 = scmp.ne.s32.totalorder %s325_s29, %s444_s12  ;;  %p449_p1 = scmp.lt.s32.totalorder %s325_s29, %s325_s29 }
   0xb   :  { %v223_v30 = vld [vmem:[%s688_s6] sm:$0xff]  ;;  %p450_p2 = scmp.lt.s32.totalorder %s444_s12, %s444_s12 }
   0xc   :  { %427 = vmatpush3.bf16.msra.mxu1 %v426_v25  ;;  %v429_v34 = vpack.c.bf16 %v224_v31, %v223_v30  ;;  %v356_v39 = vld [vmem:[%s687_s5] ss:$0 sm:$0xff] }
   0xd   :  { %421 = vmatpush3.bf16.msra.mxu0 %v420_v11  ;;  %428 = vmatprep.subr.bf16.mxu1 %v515_v3  ;;  %p451_p3 = por %p450_p2, %p449_p1 }
   0xe   :  { %422 = vmatprep.subr.bf16.mxu0 %v515_v3 }
   0xf   :  { %p452_p4 = pnand %p451_p3, %p445_p0 }
  0x11   :  { %424 = vmatpush3.bf16.msra.mxu0 %v423_v14 }
  0x74   :  { %v37_v16 = vpop.permute.xlu0 %36 }
  0x75   :  { %v40_v17 = vsel %vm39_vm1, %v32_v15, %v37_v16 }
  0x76   :  { %393 = vmatmul.mubr.msk.f32.vlgmr.msra.gmra.mrb[0].mxu0 %vm56_vm2, %v40_v17 }
 0x149   :  { %v126_v19 = vpop.f32.mrb[0].mxu0 }
 0x14a   :  { %v127_v20 = vadd.f32 %v354_v18, %v126_v19  ;;  %v394_v21 = vpop.f32.mrb[1].mxu0 }
 0x14c   :  { %v131_v22 = vmul.f32 0.5, %v127_v20  ;;  %302 = vrot.lane.b32.xlu1 %v127_v20, %s518_s1  ;;  %300 = vst.msk [vmem:[#allocation2] sm:$0xff] %vm149_vm3, %v127_v20 }
 0x14e   :  { %v132_v26 = vmul.f32 1.442695, %v131_v22 }
 0x150   :  { %442 = vpow2.f32 %v132_v26 }
 0x15a   :  { %v443_v27 = vpop.eup %442 }
 0x15b   :  { %135 = vrot.lane.b32.xlu0 %v443_v27, %s518_s1 }
 0x1be   :  { %v303_v28 = vpop.permute.xlu1 %302 }
 0x1bf   :  { %305 = vst.msk [vmem:[#allocation4] sm:$0xff] %vm149_vm3, %v303_v28 }
 0x1cd   :  { %v136_v32 = vpop.permute.xlu0 %135 }
 0x1ce   :  { %v138_v33 = vmul.f32 %v136_v32, %v130_v29 }
 0x1d0   :  { %v139_v35 = vadd.f32 %v138_v33, %v127_v20 }
 0x1d2   :  { %306 = vst.msk [vmem:[#allocation6] sm:$0xff] %vm149_vm3, %v139_v35  ;;  %400 = vmatmul.mubr.msk.f32.vlgmr.msra.gmra.mrb[0].mxu1 %vm149_vm3, %v139_v35 }
 0x1d3   :  { %430 = vmatpush3.bf16.msra.mxu1 %v429_v34  ;;  %410 = vmatprep.mubr.msk.f32.mxu1 %vm516_vm0, %v517_v7 }
 0x1d4   :  { %431 = vmatprep.subr.bf16.mxu1 %v515_v3 }
 0x1d7   :  { %433 = vmatpush3.bf16.msra.mxu1 %v432_v38 }
 0x2a5   :  { %v219_v40 = vpop.f32.mrb[0].mxu1 }
 0x2a6   :  { %v220_v41 = vadd.f32 %v356_v39, %v219_v40  ;;  %v401_v42 = vpop.f32.mrb[1].mxu1 }
 0x2a8   :  { %411 = vmatmul.mubr.msk.f32.vlgmr.msra.gmra.mrb[2].mxu1 %vm39_vm1, %v220_v41 }
 0x2a9   :  { %455 = shalt.err (!%p452_p4)
}
 0x2aa   :  { %s456_s5 = scalar_lea.hbm %s690_s8, 128 }
 0x2ab   :  { %p457_p5 = scmp.ne.s32.totalorder %s690_s8, %s456_s5  ;;  %p460_p6 = scmp.lt.u32.totalorder %s456_s5, %s690_s8 }
 0x2ad   :  { %p462_p7 = pnand %p460_p6, %p457_p5 }
 0x2af   :  { %465 = shalt.err (!%p462_p7)
}
 0x2b0   :  { %327 = dma.vmem_to_hbm [thread:$0]  %s325_s29, 128, %s690_s8, [#allocation5]  }
 0x2b1   :  { %s466_s18 = scalar_lea.vmem %s315_s11, 128  ;;  %p471_p9 = scmp.lt.s32.totalorder %s315_s11, %s315_s11 }
 0x2b2   :  { %p467_p8 = scmp.ne.s32.totalorder %s315_s11, %s466_s18  ;;  %p472_p10 = scmp.lt.s32.totalorder %s466_s18, %s466_s18 }
 0x2b4   :  { %p473_p11 = por %p472_p10, %p471_p9 }
 0x2b6   :  { %p474_p12 = pnand %p473_p11, %p467_p8 }
 0x2b8   :  { %477 = shalt.err (!%p474_p12)
}
 0x2b9   :  { %s478_s20 = scalar_lea.hbm %s689_s7, 128 }
 0x2ba   :  { %p479_p13 = scmp.ne.s32.totalorder %s689_s7, %s478_s20  ;;  %p482_p0 = scmp.lt.u32.totalorder %s478_s20, %s689_s7 }
 0x2bc   :  { %p484_p1 = pnand %p482_p0, %p479_p13 }
 0x2be   :  { %487 = shalt.err (!%p484_p1)
}
 0x2bf   :  { %317 = dma.vmem_to_hbm [thread:$0]  %s315_s11, 128, %s689_s7, [#allocation3]  }
 0x2c0   :  { %s521_s24 = smov [#allocation6]  }
 0x2c1   :  { %s334_s25 = sshll.u32 %s521_s24, 4  ;;  %s335_s25 = int_to_ptr.vmem [resolvable:$true] %s334_s25 }
 0x2c2   :  { %s488_s26 = scalar_lea.vmem %s335_s25, 128  ;;  %p493_p3 = scmp.lt.s32.totalorder %s335_s25, %s335_s25 }
 0x2c3   :  { %p489_p2 = scmp.ne.s32.totalorder %s335_s25, %s488_s26  ;;  %p494_p4 = scmp.lt.s32.totalorder %s488_s26, %s488_s26 }
 0x2c5   :  { %p495_p5 = por %p494_p4, %p493_p3 }
 0x2c7   :  { %p496_p6 = pnand %p495_p5, %p489_p2 }
 0x2c9   :  { %499 = shalt.err (!%p496_p6)
}
 0x2ca   :  { %s500_s29 = scalar_lea.hbm %s691_s9, 128 }
 0x2cb   :  { %p501_p7 = scmp.ne.s32.totalorder %s691_s9, %s500_s29  ;;  %p504_p8 = scmp.lt.u32.totalorder %s500_s29, %s691_s9 }
 0x2cd   :  { %p506_p9 = pnand %p504_p8, %p501_p7 }
 0x2cf   :  { %509 = shalt.err (!%p506_p9)
}
 0x2d0   :  { %337 = dma.vmem_to_hbm [thread:$0]  %s335_s25, 128, %s691_s9, [#allocation5]  }
 0x37b   :  { %v296_v43 = vpop.f32.mrb[2].mxu1 }
 0x37c   :  { %307 = vst [vmem:[%s692_s10] sm:$0xff] %v296_v43  ;;  %v412_v44 = vpop.f32.mrb[3].mxu1 }
 0x37d   :  { %510 = dma.done.wait [#allocation3], 128  }
 0x37e   :  { %511 = vsyncadd [#allocation3], 4294967168 }
 0x37f   :  { %512 = dma.done.wait [#allocation5], 256  }
 0x380   :  { %513 = vsyncadd [#allocation5], 4294967040 }
 0x381   :  { %351 = vsyncpa [#allocation3], 1 }
 0x382   :  { %352 = vsyncpa [#allocation5], 1 }

// kernel: dae_forward.5
= control target key start
LH: loop header
LB: loop body
LE: loop exit
PB: predicated region body
PF: predicated region fallthrough
CT: control target
= control target key end

     0   :  { %s1402_s9 = smov 0   ;;  %s1551_s0 = inlined_call_operand.vmem [shape: f32[2,8,8,128], index: 0, kind: input, shape index: {}]   ;;  %s1552_s1 = inlined_call_operand.vmem [shape: f32[2,32,128], index: 1, kind: input, shape index: {}]   ;;  %s1553_s2 = inlined_call_operand.vmem [shape: f32[2,8,32], index: 2, kind: output, shape index: {}]  }
   0x1 LB: > { %s1408_s10 = sadd.s32 4294967295, %s1380_s9   ;;  %p1088_p0 = scmp.ge.s32.totalorder %s1380_s9, 1  ;;  %s1380_s9 = sphi %s1402_s9, %s12_s9  }
   0x2   : > { %p122_p1 = scmp.lt.s32.totalorder %s1380_s9, 3 }
   0x4   : > { %p123_p2 = pnand %p1088_p0, %p122_p1 }
   0x5   : > { %p148_p3 = scmp.lt.s32.totalorder (!%p123_p2), %s1408_s10, 1  ;;  %v1382_v0 = vmov (!%p123_p2), 0.0|0.0   ;;  %vm1383_vm0 = vmmov (!%p123_p2), 0   ;;  %v1384_v1 = vmov (!%p123_p2), 0.0   ;;  %p166_p4 = scmp.eq.s32.totalorder (!%p123_p2), %s1408_s10, 0  ;;  %vm171_vm1 = vcmask (!%p123_p2), 261120  }
   0x6   : > { %126 = sbr.rel (%p123_p2) target bundleno = 5644 (0x160c), region = 28  ;;  %1249 = vmatprep.subr.bf16.mxu0 (!%p123_p2), %v1382_v0  ;;  %1169 = vmatprep.mubr.msk.f32.mxu0 (!%p123_p2), %vm1383_vm0, %v1384_v1  ;;  %s1385_s23 = smov (!%p123_p2), 64  }
   0x7   : > { %1255 = vmatprep.subr.bf16.mxu1 (!%p123_p2), %v1382_v0  ;;  %1180 = vmatprep.mubr.msk.f32.mxu1 (!%p123_p2), %vm1383_vm0, %v1384_v1  ;;  %s1386_s24 = smov (!%p123_p2), 32  }
   0xd   : > { %s1417_s11 = scalar_select %p148_p3, %s1408_s10, 1 }
   0xe   : > { %s167_s16 = scalar_select %p166_p4, 0, 7 }
   0xf   : > { %s1120_s12 = sshll.u32 %s1417_s11, 5  ;;  %s1119_s17 = sshll.u32 %s1417_s11, 6 }
  0x10   : > { %s157_s15 = scalar_lea.vmem %s1552_s1, %s1120_s12  ;;  %s1452_s20 = scalar_lea.vmem %s1551_s0, %s1119_s17 }
  0x11   : > { %v162_v2 = vld [vmem:[%s157_s15] sm:$0xff]  ;;  %v163_v3 = vld [vmem:[%s157_s15 + $0x8] sm:$0xff]  ;;  %v164_v4 = vld [vmem:[%s157_s15 + $0x10] sm:$0xff]  ;;  %s1094_s21 = sshll.u32 %s167_s16, 3  ;;  %s1093_s10 = sshll.u32 %s1417_s11, 3 }
  0x12   : > { %v1426_v5 = vpack.c.bf16 %v163_v3, %v162_v2  ;;  %v165_v6 = vld [vmem:[%s157_s15 + $0x18] sm:$0xff]  ;;  %s169_s22 = scalar_lea.vmem %s1452_s20, %s1094_s21 }
  0x13   : > { %v1429_v7 = vpack.c.bf16 %v165_v6, %v164_v4  ;;  %v170_v8 = vld [vmem:[%s169_s22] sm:$0xff]  ;;  %s270_s25 = scalar_select %p166_p4, 1, 6 }
  0x14   : > { %1251 = vmatpush3.bf16.msra.mxu0 %v1426_v5  ;;  %1257 = vmatpush3.bf16.msra.mxu1 %v1426_v5  ;;  %s374_s28 = scalar_select %p166_p4, 2, 5 }
  0x15   : > { %1252 = vmatprep.subr.bf16.mxu0 %v1382_v0  ;;  %1258 = vmatprep.subr.bf16.mxu1 %v1382_v0  ;;  %s1096_s26 = sshll.u32 %s270_s25, 3  ;;  %s161_s25 = scalar_lea.vmem %s1553_s2, %s1093_s10 }
  0x16   : > { %s272_s27 = scalar_lea.vmem %s1452_s20, %s1096_s26  ;;  %s1099_s29 = sshll.u32 %s374_s28, 3 }
  0x17   : > { %v273_v26 = vld [vmem:[%s272_s27] sm:$0xff]  ;;  %s376_s30 = scalar_lea.vmem %s1452_s20, %s1099_s29 }
  0x18   : > { %1254 = vmatpush3.bf16.msra.mxu0 %v1429_v7  ;;  %1260 = vmatpush3.bf16.msra.mxu1 %v1429_v7  ;;  %v377_v44 = vld [vmem:[%s376_s30] sm:$0xff]  ;;  %s478_s3 = scalar_select %p166_p4, 3, 4 }
  0x19   : > { %1261 = vmatprep.subr.bf16.mxu0 %v1382_v0  ;;  %1267 = vmatprep.subr.bf16.mxu1 %v1382_v0  ;;  %s582_s6 = scalar_select %p166_p4, 4, 3 }
  0x1a   : > { %s1102_s4 = sshll.u32 %s478_s3, 3 }
  0x1b   : > { %1170 = vmatmul.mubr.f32.vlgmr.msra.gmra.mrb[0].mxu0 %v1384_v1  ;;  %s480_s5 = scalar_lea.vmem %s1452_s20, %s1102_s4  ;;  %s1105_s7 = sshll.u32 %s582_s6, 3 }
  0x1c   : > { %1263 = vmatpush3.bf16.msra.mxu0 %v1426_v5  ;;  %1191 = vmatprep.mubr.msk.f32.mxu0 %vm1383_vm0, %v1384_v1  ;;  %v481_v62 = vld [vmem:[%s480_s5] sm:$0xff]  ;;  %s584_s8 = scalar_lea.vmem %s1452_s20, %s1105_s7 }
  0x1d   : > { %1264 = vmatprep.subr.bf16.mxu0 %v1382_v0  ;;  %s686_s12 = scalar_select %p166_p4, 5, 2 }
  0x1e   : > { %s790_s15 = scalar_select %p166_p4, 6, 1 }
  0x1f   : > { %s1108_s13 = sshll.u32 %s686_s12, 3 }
  0x20   : > { %1266 = vmatpush3.bf16.msra.mxu0 %v1429_v7  ;;  %s688_s14 = scalar_lea.vmem %s1452_s20, %s1108_s13  ;;  %s1111_s16 = sshll.u32 %s790_s15, 3 }
  0x21   : > { %1273 = vmatprep.subr.bf16.mxu0 %v1382_v0  ;;  %s792_s17 = scalar_lea.vmem %s1452_s20, %s1111_s16 }
  0x22   : > { %s894_s18 = scalar_select %p166_p4, 7, 0 }
  0x24   : > { %s1114_s19 = sshll.u32 %s894_s18, 3 }
  0x25   : > { %s896_s21 = scalar_lea.vmem %s1452_s20, %s1114_s19 }
  0xee   : > { %v241_v9 = vpop.f32.mrb[0].mxu0 }
  0xef   : > { %v245_v10 = vadd.f32 %v241_v9, %v170_v8  ;;  %v1171_v11 = vpop.f32.mrb[1].mxu0 }
  0xf1   : > { %1310 = vtanh.f32 %v245_v10  ;;  %v1095_v13 = vmul.f32 -1.442695, %v245_v10 }
  0xf3   : > { %1312 = vpow2.f32 %v1095_v13 }
  0xfb   : > { %v1311_v12 = vpop.eup %1310 }
  0xfc   : > { %255 = vrot.lane.b32.xlu0 %v1311_v12, %s1385_s23 }
  0xfd   : > { %v1313_v14 = vpop.eup %1312 }
  0xfe   : > { %v249_v15 = vadd.f32 1.0, %v1313_v14 }
 0x100   : > { %1314 = vrcp.f32 %v249_v15 }
 0x10a   : > { %v1315_v16 = vpop.eup %1314 }
 0x10b   : > { %v253_v19 = vmul.f32 0.0, %v1315_v16 }
 0x16e   : > { %v256_v17 = vpop.permute.xlu0 %255 }
 0x16f   : > { %v258_v18 = vmul.f32 %v1315_v16, %v256_v17 }
 0x171   : > { %260 = vrot.lane.b32.xlu0 %v258_v18, %s1386_s24 }
 0x1e3   : > { %v261_v20 = vpop.permute.xlu0 %260 }
 0x1e4   : > { %v263_v21 = vadd.f32 %v261_v20, %v253_v19  ;;  %v585_v20 = vld [vmem:[%s584_s8] sm:$0xff] }
 0x1e6   : > { %1316 = vtanh.f32 %v263_v21 }
 0x1f0   : > { %v1317_v22 = vpop.eup %1316 }
 0x1f1   : > { %266 = vrot.lane.b32.xlu1 %v1317_v22, %s1385_s23 }
 0x263   : > { %v267_v23 = vpop.permute.xlu1 %266 }
 0x264   : > { %v269_v24 = vmul.f32 %v1315_v16, %v267_v23 }
 0x266   : > { %275 = vrot.lane.b32.xlu1 %v269_v24, %s1386_s24 }
 0x2d8   : > { %v276_v25 = vpop.permute.xlu1 %275 }
 0x2d9   : > { %1181 = vmatmul.mubr.msk.f32.vlgmr.msra.gmra.mrb[0].mxu1 %vm171_vm1, %v276_v25 }
 0x2da   : > { %1269 = vmatpush3.bf16.msra.mxu1 %v1426_v5  ;;  %1202 = vmatprep.mubr.msk.f32.mxu1 %vm1383_vm0, %v1384_v1 }
 0x2db   : > { %1270 = vmatprep.subr.bf16.mxu1 %v1382_v0 }
 0x2de   : > { %1272 = vmatpush3.bf16.msra.mxu1 %v1429_v7 }
 0x2df   : > { %1279 = vmatprep.subr.bf16.mxu1 %v1382_v0 }
 0x3ac   : > { %v345_v27 = vpop.f32.mrb[0].mxu1 }
 0x3ad   : > { %v349_v28 = vadd.f32 %v345_v27, %v273_v26  ;;  %v1182_v29 = vpop.f32.mrb[1].mxu1 }
 0x3af   : > { %1318 = vtanh.f32 %v349_v28  ;;  %v1098_v31 = vmul.f32 -1.442695, %v349_v28 }
 0x3b1   : > { %1320 = vpow2.f32 %v1098_v31 }
 0x3b9   : > { %v1319_v30 = vpop.eup %1318 }
 0x3ba   : > { %359 = vrot.lane.b32.xlu0 %v1319_v30, %s1385_s23 }
 0x3bb   : > { %v1321_v32 = vpop.eup %1320 }
 0x3bc   : > { %v353_v33 = vadd.f32 1.0, %v1321_v32 }
 0x3be   : > { %1322 = vrcp.f32 %v353_v33 }
 0x3c8   : > { %v1323_v34 = vpop.eup %1322 }
 0x3c9   : > { %v357_v37 = vmul.f32 %v1323_v34, %v263_v21 }
 0x42c   : > { %v360_v35 = vpop.permute.xlu0 %359 }
 0x42d   : > { %v362_v36 = vmul.f32 %v1323_v34, %v360_v35 }
 0x42f   : > { %364 = vrot.lane.b32.xlu1 %v362_v36, %s1386_s24 }
 0x4a1   : > { %v365_v38 = vpop.permute.xlu1 %364 }
 0x4a2   : > { %v367_v39 = vadd.f32 %v365_v38, %v357_v37  ;;  %v689_v38 = vld [vmem:[%s688_s14] sm:$0xff] }
 0x4a4   : > { %1324 = vtanh.f32 %v367_v39 }
 0x4ae   : > { %v1325_v40 = vpop.eup %1324 }
 0x4af   : > { %370 = vrot.lane.b32.xlu0 %v1325_v40, %s1385_s23 }
 0x521   : > { %v371_v41 = vpop.permute.xlu0 %370 }
 0x522   : > { %v373_v42 = vmul.f32 %v1323_v34, %v371_v41 }
 0x524   : > { %379 = vrot.lane.b32.xlu1 %v373_v42, %s1386_s24 }
 0x596   : > { %v380_v43 = vpop.permute.xlu1 %379 }
 0x597   : > { %1192 = vmatmul.mubr.msk.f32.vlgmr.msra.gmra.mrb[2].mxu0 %vm171_vm1, %v380_v43 }
 0x598   : > { %1275 = vmatpush3.bf16.msra.mxu0 %v1426_v5  ;;  %1213 = vmatprep.mubr.msk.f32.mxu0 %vm1383_vm0, %v1384_v1 }
 0x599   : > { %1276 = vmatprep.subr.bf16.mxu0 %v1382_v0 }
 0x59c   : > { %1278 = vmatpush3.bf16.msra.mxu0 %v1429_v7 }
 0x59d   : > { %1285 = vmatprep.subr.bf16.mxu0 %v1382_v0 }
 0x66a   : > { %v449_v45 = vpop.f32.mrb[2].mxu0 }
 0x66b   : > { %v453_v46 = vadd.f32 %v449_v45, %v377_v44  ;;  %v1193_v47 = vpop.f32.mrb[3].mxu0 }
 0x66d   : > { %1326 = vtanh.f32 %v453_v46  ;;  %v1101_v49 = vmul.f32 -1.442695, %v453_v46 }
 0x66f   : > { %1328 = vpow2.f32 %v1101_v49 }
 0x677   : > { %v1327_v48 = vpop.eup %1326 }
 0x678   : > { %463 = vrot.lane.b32.xlu0 %v1327_v48, %s1385_s23 }
 0x679   : > { %v1329_v50 = vpop.eup %1328 }
 0x67a   : > { %v457_v51 = vadd.f32 1.0, %v1329_v50 }
 0x67c   : > { %1330 = vrcp.f32 %v457_v51 }
 0x686   : > { %v1331_v52 = vpop.eup %1330 }
 0x687   : > { %v461_v55 = vmul.f32 %v1331_v52, %v367_v39 }
 0x6ea   : > { %v464_v53 = vpop.permute.xlu0 %463 }
 0x6eb   : > { %v466_v54 = vmul.f32 %v1331_v52, %v464_v53 }
 0x6ed   : > { %468 = vrot.lane.b32.xlu1 %v466_v54, %s1386_s24 }
 0x75f   : > { %v469_v56 = vpop.permute.xlu1 %468 }
 0x760   : > { %v471_v57 = vadd.f32 %v469_v56, %v461_v55 }
 0x762   : > { %1332 = vtanh.f32 %v471_v57 }
 0x76c   : > { %v1333_v58 = vpop.eup %1332 }
 0x76d   : > { %474 = vrot.lane.b32.xlu0 %v1333_v58, %s1385_s23 }
 0x7df   : > { %v475_v59 = vpop.permute.xlu0 %474 }
 0x7e0   : > { %v477_v60 = vmul.f32 %v1331_v52, %v475_v59  ;;  %v793_v52 = vld [vmem:[%s792_s17] sm:$0xff] }
 0x7e2   : > { %483 = vrot.lane.b32.xlu1 %v477_v60, %s1386_s24 }
 0x854   : > { %v484_v61 = vpop.permute.xlu1 %483 }
 0x855   : > { %1203 = vmatmul.mubr.msk.f32.vlgmr.msra.gmra.mrb[2].mxu1 %vm171_vm1, %v484_v61 }
 0x856   : > { %1281 = vmatpush3.bf16.msra.mxu1 %v1426_v5  ;;  %1224 = vmatprep.mubr.msk.f32.mxu1 %vm1383_vm0, %v1384_v1 }
 0x857   : > { %1282 = vmatprep.subr.bf16.mxu1 %v1382_v0 }
 0x85a   : > { %1284 = vmatpush3.bf16.msra.mxu1 %v1429_v7 }
 0x85b   : > { %1291 = vmatprep.subr.bf16.mxu1 %v1382_v0 }
 0x928   : > { %v553_v63 = vpop.f32.mrb[2].mxu1 }
 0x929   : > { %v557_v2 = vadd.f32 %v553_v63, %v481_v62  ;;  %v1204_v3 = vpop.f32.mrb[3].mxu1 }
 0x92b   : > { %1334 = vtanh.f32 %v557_v2  ;;  %v1104_v6 = vmul.f32 -1.442695, %v557_v2 }
 0x92d   : > { %1336 = vpow2.f32 %v1104_v6 }
 0x935   : > { %v1335_v4 = vpop.eup %1334 }
 0x936   : > { %567 = vrot.lane.b32.xlu0 %v1335_v4, %s1385_s23 }
 0x937   : > { %v1337_v8 = vpop.eup %1336 }
 0x938   : > { %v561_v9 = vadd.f32 1.0, %v1337_v8 }
 0x93a   : > { %1338 = vrcp.f32 %v561_v9 }
 0x944   : > { %v1339_v10 = vpop.eup %1338 }
 0x945   : > { %v565_v13 = vmul.f32 %v1339_v10, %v471_v57 }
 0x9a8   : > { %v568_v11 = vpop.permute.xlu0 %567 }
 0x9a9   : > { %v570_v12 = vmul.f32 %v1339_v10, %v568_v11 }
 0x9ab   : > { %572 = vrot.lane.b32.xlu1 %v570_v12, %s1386_s24 }
 0xa1d   : > { %v573_v14 = vpop.permute.xlu1 %572 }
 0xa1e   : > { %v575_v15 = vadd.f32 %v573_v14, %v565_v13 }
 0xa20   : > { %1340 = vtanh.f32 %v575_v15 }
 0xa2a   : > { %v1341_v16 = vpop.eup %1340 }
 0xa2b   : > { %578 = vrot.lane.b32.xlu0 %v1341_v16, %s1385_s23 }
 0xa9d   : > { %v579_v17 = vpop.permute.xlu0 %578 }
 0xa9e   : > { %v581_v18 = vmul.f32 %v1339_v10, %v579_v17  ;;  %v897_v10 = vld [vmem:[%s896_s21] sm:$0xff] }
 0xaa0   : > { %587 = vrot.lane.b32.xlu1 %v581_v18, %s1386_s24 }
 0xb12   : > { %v588_v19 = vpop.permute.xlu1 %587 }
 0xb13   : > { %1214 = vmatmul.mubr.msk.f32.vlgmr.msra.gmra.mrb[4].mxu0 %vm171_vm1, %v588_v19 }
 0xb14   : > { %1287 = vmatpush3.bf16.msra.mxu0 %v1426_v5  ;;  %1235 = vmatprep.mubr.msk.f32.mxu0 %vm1383_vm0, %v1384_v1 }
 0xb15   : > { %1288 = vmatprep.subr.bf16.mxu0 %v1382_v0 }
 0xb18   : > { %1290 = vmatpush3.bf16.msra.mxu0 %v1429_v7 }
 0xbe6   : > { %v657_v21 = vpop.f32.mrb[4].mxu0 }
 0xbe7   : > { %v661_v22 = vadd.f32 %v657_v21, %v585_v20  ;;  %v1215_v23 = vpop.f32.mrb[5].mxu0 }
 0xbe9   : > { %1342 = vtanh.f32 %v661_v22  ;;  %v1107_v25 = vmul.f32 -1.442695, %v661_v22 }
 0xbeb   : > { %1344 = vpow2.f32 %v1107_v25 }
 0xbf3   : > { %v1343_v24 = vpop.eup %1342 }
 0xbf4   : > { %671 = vrot.lane.b32.xlu0 %v1343_v24, %s1385_s23 }
 0xbf5   : > { %v1345_v26 = vpop.eup %1344 }
 0xbf6   : > { %v665_v27 = vadd.f32 1.0, %v1345_v26 }
 0xbf8   : > { %1346 = vrcp.f32 %v665_v27 }
 0xc02   : > { %v1347_v28 = vpop.eup %1346 }
 0xc03   : > { %v669_v31 = vmul.f32 %v1347_v28, %v575_v15 }
 0xc66   : > { %v672_v29 = vpop.permute.xlu0 %671 }
 0xc67   : > { %v674_v30 = vmul.f32 %v1347_v28, %v672_v29 }
 0xc69   : > { %676 = vrot.lane.b32.xlu1 %v674_v30, %s1386_s24 }
 0xcdb   : > { %v677_v32 = vpop.permute.xlu1 %676 }
 0xcdc   : > { %v679_v33 = vadd.f32 %v677_v32, %v669_v31 }
 0xcde   : > { %1348 = vtanh.f32 %v679_v33 }
 0xce8   : > { %v1349_v34 = vpop.eup %1348 }
 0xce9   : > { %682 = vrot.lane.b32.xlu0 %v1349_v34, %s1385_s23 }
 0xd5b   : > { %v683_v35 = vpop.permute.xlu0 %682 }
 0xd5c   : > { %v685_v36 = vmul.f32 %v1347_v28, %v683_v35 }
 0xd5e   : > { %691 = vrot.lane.b32.xlu1 %v685_v36, %s1386_s24 }
 0xdd0   : > { %v692_v37 = vpop.permute.xlu1 %691 }
 0xdd1   : > { %1225 = vmatmul.mubr.msk.f32.vlgmr.msra.gmra.mrb[4].mxu1 %vm171_vm1, %v692_v37 }
 0xdd2   : > { %1293 = vmatpush3.bf16.msra.mxu1 %v1426_v5  ;;  %1246 = vmatprep.mubr.msk.f32.mxu1 %vm1383_vm0, %v1384_v1 }
 0xdd3   : > { %1294 = vmatprep.subr.bf16.mxu1 %v1382_v0 }
 0xdd6   : > { %1296 = vmatpush3.bf16.msra.mxu1 %v1429_v7 }
 0xea4   : > { %v761_v39 = vpop.f32.mrb[4].mxu1 }
 0xea5   : > { %v765_v40 = vadd.f32 %v761_v39, %v689_v38  ;;  %v1226_v41 = vpop.f32.mrb[5].mxu1 }
 0xea7   : > { %1350 = vtanh.f32 %v765_v40  ;;  %v1110_v5 = vmul.f32 -1.442695, %v765_v40 }
 0xea9   : > { %1352 = vpow2.f32 %v1110_v5 }
 0xeb1   : > { %v1351_v42 = vpop.eup %1350 }
 0xeb2   : > { %775 = vrot.lane.b32.xlu0 %v1351_v42, %s1385_s23 }
 0xeb3   : > { %v1353_v43 = vpop.eup %1352 }
 0xeb4   : > { %v769_v1 = vadd.f32 1.0, %v1353_v43 }
 0xeb6   : > { %1354 = vrcp.f32 %v769_v1 }
 0xec0   : > { %v1355_v0 = vpop.eup %1354 }
 0xec1   : > { %v773_v45 = vmul.f32 %v1355_v0, %v679_v33 }
 0xf24   : > { %v776_v7 = vpop.permute.xlu0 %775 }
 0xf25   : > { %v778_v44 = vmul.f32 %v1355_v0, %v776_v7 }
 0xf27   : > { %780 = vrot.lane.b32.xlu1 %v778_v44, %s1386_s24 }
 0xf99   : > { %v781_v46 = vpop.permute.xlu1 %780 }
 0xf9a   : > { %v783_v47 = vadd.f32 %v781_v46, %v773_v45 }
 0xf9c   : > { %1356 = vtanh.f32 %v783_v47 }
 0xfa6   : > { %v1357_v48 = vpop.eup %1356 }
 0xfa7   : > { %786 = vrot.lane.b32.xlu0 %v1357_v48, %s1385_s23 }
0x1019   : > { %v787_v49 = vpop.permute.xlu0 %786 }
0x101a   : > { %v789_v50 = vmul.f32 %v1355_v0, %v787_v49 }
0x101c   : > { %795 = vrot.lane.b32.xlu1 %v789_v50, %s1386_s24 }
0x108e   : > { %v796_v51 = vpop.permute.xlu1 %795 }
0x108f   : > { %1236 = vmatmul.mubr.msk.f32.vlgmr.msra.gmra.mrb[6].mxu0 %vm171_vm1, %v796_v51 }
0x1162   : > { %v865_v53 = vpop.f32.mrb[6].mxu0 }
0x1163   : > { %v869_v54 = vadd.f32 %v865_v53, %v793_v52  ;;  %v1237_v55 = vpop.f32.mrb[7].mxu0 }
0x1165   : > { %1358 = vtanh.f32 %v869_v54  ;;  %v1113_v57 = vmul.f32 -1.442695, %v869_v54 }
0x1167   : > { %1360 = vpow2.f32 %v1113_v57 }
0x116f   : > { %v1359_v56 = vpop.eup %1358 }
0x1170   : > { %879 = vrot.lane.b32.xlu0 %v1359_v56, %s1385_s23 }
0x1171   : > { %v1361_v58 = vpop.eup %1360 }
0x1172   : > { %v873_v59 = vadd.f32 1.0, %v1361_v58 }
0x1174   : > { %1362 = vrcp.f32 %v873_v59 }
0x117e   : > { %v1363_v60 = vpop.eup %1362 }
0x117f   : > { %v877_v63 = vmul.f32 %v1363_v60, %v783_v47 }
0x11e2   : > { %v880_v61 = vpop.permute.xlu0 %879 }
0x11e3   : > { %v882_v62 = vmul.f32 %v1363_v60, %v880_v61 }
0x11e5   : > { %884 = vrot.lane.b32.xlu1 %v882_v62, %s1386_s24 }
0x1257   : > { %v885_v2 = vpop.permute.xlu1 %884 }
0x1258   : > { %v887_v3 = vadd.f32 %v885_v2, %v877_v63 }
0x125a   : > { %1364 = vtanh.f32 %v887_v3 }
0x1264   : > { %v1365_v4 = vpop.eup %1364 }
0x1265   : > { %890 = vrot.lane.b32.xlu0 %v1365_v4, %s1385_s23 }
0x12d7   : > { %v891_v6 = vpop.permute.xlu0 %890 }
0x12d8   : > { %v893_v8 = vmul.f32 %v1363_v60, %v891_v6 }
0x12da   : > { %899 = vrot.lane.b32.xlu1 %v893_v8, %s1386_s24 }
0x134c   : > { %v900_v9 = vpop.permute.xlu1 %899 }
0x134d   : > { %1247 = vmatmul.mubr.msk.f32.vlgmr.msra.gmra.mrb[6].mxu1 %vm171_vm1, %v900_v9 }
0x1420   : > { %v969_v11 = vpop.f32.mrb[6].mxu1 }
0x1421   : > { %v973_v12 = vadd.f32 %v969_v11, %v897_v10  ;;  %v1248_v13 = vpop.f32.mrb[7].mxu1 }
0x1423   : > { %1366 = vtanh.f32 %v973_v12  ;;  %v1116_v15 = vmul.f32 -1.442695, %v973_v12 }
0x1425   : > { %1368 = vpow2.f32 %v1116_v15 }
0x142d   : > { %v1367_v14 = vpop.eup %1366 }
0x142e   : > { %983 = vrot.lane.b32.xlu0 %v1367_v14, %s1385_s23 }
0x142f   : > { %v1369_v16 = vpop.eup %1368 }
0x1430   : > { %v977_v17 = vadd.f32 1.0, %v1369_v16 }
0x1432   : > { %1370 = vrcp.f32 %v977_v17 }
0x143c   : > { %v1371_v18 = vpop.eup %1370 }
0x143d   : > { %v981_v21 = vmul.f32 %v1371_v18, %v887_v3 }
0x14a0   : > { %v984_v19 = vpop.permute.xlu0 %983 }
0x14a1   : > { %v986_v20 = vmul.f32 %v1371_v18, %v984_v19 }
0x14a3   : > { %988 = vrot.lane.b32.xlu1 %v986_v20, %s1386_s24 }
0x1515   : > { %v989_v22 = vpop.permute.xlu1 %988 }
0x1516   : > { %v991_v23 = vadd.f32 %v989_v22, %v981_v21 }
0x1518   : > { %1372 = vtanh.f32 %v991_v23 }
0x1522   : > { %v1373_v24 = vpop.eup %1372 }
0x1523   : > { %994 = vrot.lane.b32.xlu0 %v1373_v24, %s1385_s23 }
0x1595   : > { %v995_v25 = vpop.permute.xlu0 %994 }
0x1596   : > { %v997_v26 = vmul.f32 %v1371_v18, %v995_v25 }
0x1598   : > { %999 = vrot.lane.b32.xlu1 %v997_v26, %s1386_s24 }
0x160a   : > { %v1000_v27 = vpop.permute.xlu1 %999 }
0x160b   : > { %1002 = vst.msk [vmem:[%s161_s25] sm:$0xff] %vm171_vm1, %v1000_v27 }
0x160c PF: > { %s12_s9 = sadd.s32 1, %s1380_s9  }
0x160d   : > { %p9_p5 = scmp.ge.s32.totalorder %s12_s9, 4  }
0x160f   :  { %11 = sbr.rel (!%p9_p5) target bundleno = 1 (0x1), region = 69 }

// kernel: dae_forward.7
= control target key start
LH: loop header
LB: loop body
LE: loop exit
PB: predicated region body
PF: predicated region fallthrough
CT: control target
= control target key end

     0   :  { %v1934_v3 = vmov 0.0|0.0   ;;  %vm1935_vm0 = vmmov 0   ;;  %v1936_v6 = vmov 0.0   ;;  %s2210_s0 = inlined_call_operand.vmem [shape: f32[8,8,128], index: 0, kind: input, shape index: {}]   ;;  %s2211_s1 = inlined_call_operand.vmem [shape: f32[8,128], index: 1, kind: input, shape index: {}]   ;;  %s2212_s2 = inlined_call_operand.vmem [shape: f32[32,128], index: 2, kind: input, shape index: {}]   ;;  %s2213_s3 = inlined_call_operand.vmem [shape: f32[32,128], index: 3, kind: input, shape index: {}]   ;;  %s2214_s4 = inlined_call_operand.vmem [shape: f32[1,128], index: 4, kind: input, shape index: {}]   ;;  %s2215_s5 = inlined_call_operand.hbm [shape: f32[8,8,128], index: 5, kind: output, shape index: {}]  }
   0x1   :  { %v21_v0 = vld [vmem:[%s2212_s2] sm:$0xff]  ;;  %v22_v1 = vld [vmem:[%s2212_s2 + $0x8] sm:$0xff]  ;;  %v23_v2 = vld [vmem:[%s2212_s2 + $0x10] sm:$0xff]  ;;  %1742 = vmatprep.subr.bf16.mxu0 %v1934_v3  ;;  %1574 = vmatprep.mubr.msk.f32.mxu0 %vm1935_vm0, %v1936_v6 }
   0x2   :  { %v1982_v4 = vpack.c.bf16 %v22_v1, %v21_v0  ;;  %v24_v5 = vld [vmem:[%s2212_s2 + $0x18] sm:$0xff]  ;;  %1748 = vmatprep.subr.bf16.mxu1 %v1934_v3  ;;  %1585 = vmatprep.mubr.msk.f32.mxu1 %vm1935_vm0, %v1936_v6 }
   0x3   :  { %10 = vsyncpa [#allocation3], 0  ;;  %v1993_v7 = vpack.c.bf16 %v24_v5, %v23_v2  ;;  %v2008_v8 = vld [vmem:[%s2211_s1] sm:$0xff]  ;;  %s1937_s29 = smov 64   ;;  %s1938_s1 = smov 32   ;;  %v26_v25 = vld [vmem:[%s2213_s3 + $0x8] sm:$0xff] }
   0x4   :  { %1744 = vmatpush3.bf16.msra.mxu0 %v1982_v4  ;;  %v31_v9 = vld [vmem:[%s2210_s0] sm:$0xff]  ;;  %v27_v26 = vld [vmem:[%s2213_s3 + $0x10] sm:$0xff]  ;;  %v28_v28 = vld [vmem:[%s2213_s3 + $0x18] sm:$0xff]  ;;  %vm33_vm1 = vcmask 261120  }
   0x5   :  { %1745 = vmatprep.subr.bf16.mxu0 %v1934_v3  ;;  %v32_v10 = vadd.f32 %v31_v9, %v2008_v8  ;;  %v25_v24 = vld [vmem:[%s2213_s3] sm:$0xff]  ;;  %v2031_v29 = vpack.c.bf16 %v28_v28, %v27_v26  ;;  %v1458_v34 = vld [vmem:[%s2210_s0 + $0x8] sm:$0xff]  ;;  %v1462_v57 = vld [vmem:[%s2210_s0 + $0x10] sm:$0xff] }
   0x6   :  { %v2025_v27 = vpack.c.bf16 %v26_v25, %v25_v24  ;;  %v216_v35 = vadd.f32 %v1458_v34, %v2008_v8  ;;  %v2059_v36 = vld [vmem:[%s2214_s4] ss:$0 sm:$0xff]  ;;  %v391_v58 = vadd.f32 %v1462_v57, %v2008_v8 }
   0x8   :  { %1747 = vmatpush3.bf16.msra.mxu0 %v1993_v7  ;;  %1750 = vmatpush3.bf16.msra.mxu1 %v2025_v27 }
   0x9   :  { %1754 = vmatprep.subr.bf16.mxu0 %v1934_v3  ;;  %1751 = vmatprep.subr.bf16.mxu1 %v1934_v3 }
   0xb   :  { %1575 = vmatmul.mubr.f32.vlgmr.msra.gmra.mrb[0].mxu0 %v1936_v6 }
   0xc   :  { %1756 = vmatpush3.bf16.msra.mxu0 %v1982_v4  ;;  %1596 = vmatprep.mubr.msk.f32.mxu0 %vm1935_vm0, %v1936_v6 }
   0xd   :  { %1757 = vmatprep.subr.bf16.mxu0 %v1934_v3  ;;  %1753 = vmatpush3.bf16.msra.mxu1 %v2031_v29 }
   0xe   :  { %1760 = vmatprep.subr.bf16.mxu1 %v1934_v3 }
  0x10   :  { %1759 = vmatpush3.bf16.msra.mxu0 %v1993_v7 }
  0x11   :  { %1766 = vmatprep.subr.bf16.mxu0 %v1934_v3 }
  0xde   :  { %v103_v11 = vpop.f32.mrb[0].mxu0 }
  0xdf   :  { %v107_v12 = vadd.f32 %v103_v11, %v32_v10  ;;  %v1576_v13 = vpop.f32.mrb[1].mxu0 }
  0xe1   :  { %1846 = vtanh.f32 %v107_v12  ;;  %v1455_v15 = vmul.f32 -1.442695, %v107_v12 }
  0xe3   :  { %1848 = vpow2.f32 %v1455_v15 }
  0xeb   :  { %v1847_v14 = vpop.eup %1846 }
  0xec   :  { %117 = vrot.lane.b32.xlu0 %v1847_v14, %s1937_s29 }
  0xed   :  { %v1849_v16 = vpop.eup %1848 }
  0xee   :  { %v111_v17 = vadd.f32 1.0, %v1849_v16 }
  0xf0   :  { %1850 = vrcp.f32 %v111_v17 }
  0xfa   :  { %v1851_v18 = vpop.eup %1850 }
  0xfb   :  { %v115_v21 = vmul.f32 0.0, %v1851_v18 }
 0x15e   :  { %v118_v19 = vpop.permute.xlu0 %117 }
 0x15f   :  { %v120_v20 = vmul.f32 %v1851_v18, %v118_v19 }
 0x161   :  { %122 = vrot.lane.b32.xlu0 %v120_v20, %s1938_s1  ;;  %v1466_v20 = vld [vmem:[%s2210_s0 + $0x18] sm:$0xff] }
 0x1d3   :  { %v123_v22 = vpop.permute.xlu0 %122 }
 0x1d4   :  { %v125_v23 = vadd.f32 %v123_v22, %v115_v21  ;;  %v566_v21 = vadd.f32 %v1466_v20, %v2008_v8 }
 0x1d6   :  { %1852 = vtanh.f32 %v125_v23 }
 0x1e0   :  { %v1853_v30 = vpop.eup %1852 }
 0x1e1   :  { %128 = vrot.lane.b32.xlu1 %v1853_v30, %s1937_s29 }
 0x253   :  { %v129_v31 = vpop.permute.xlu1 %128 }
 0x254   :  { %v131_v32 = vmul.f32 %v1851_v18, %v129_v31 }
 0x256   :  { %139 = vrot.lane.b32.xlu1 %v131_v32, %s1938_s1 }
 0x2c8   :  { %v140_v33 = vpop.permute.xlu1 %139 }
 0x2c9   :  { %1586 = vmatmul.mubr.msk.f32.vlgmr.msra.gmra.mrb[0].mxu1 %vm33_vm1, %v140_v33  ;;  %1597 = vmatmul.mubr.msk.f32.vlgmr.msra.gmra.mrb[2].mxu0 %vm33_vm1, %v140_v33 }
 0x2ca   :  { %1762 = vmatpush3.bf16.msra.mxu1 %v2025_v27  ;;  %1768 = vmatpush3.bf16.msra.mxu0 %v1982_v4 }
 0x2cb   :  { %1763 = vmatprep.subr.bf16.mxu1 %v1934_v3  ;;  %1769 = vmatprep.subr.bf16.mxu0 %v1934_v3 }
 0x2cc   :  { %1607 = vmatprep.mubr.msk.f32.mxu1 %vm1935_vm0, %v1936_v6  ;;  %1618 = vmatprep.mubr.msk.f32.mxu0 %vm1935_vm0, %v1936_v6 }
 0x2ce   :  { %1765 = vmatpush3.bf16.msra.mxu1 %v2031_v29  ;;  %1771 = vmatpush3.bf16.msra.mxu0 %v1993_v7 }
 0x2cf   :  { %1772 = vmatprep.subr.bf16.mxu1 %v1934_v3  ;;  %1778 = vmatprep.subr.bf16.mxu0 %v1934_v3 }
 0x39c   :  { %v209_v37 = vpop.f32.mrb[0].mxu1  ;;  %v283_v38 = vpop.f32.mrb[2].mxu0 }
 0x39d   :  { %v210_v39 = vadd.f32 %v2059_v36, %v209_v37  ;;  %v287_v40 = vadd.f32 %v283_v38, %v216_v35  ;;  %v1587_v41 = vpop.f32.mrb[1].mxu1  ;;  %v1598_v42 = vpop.f32.mrb[3].mxu0 }
 0x39f   :  { %213 = vst [vmem:[#allocation2] sm:$0xff] %v210_v39  ;;  %1854 = vtanh.f32 %v287_v40  ;;  %v1460_v44 = vmul.f32 -1.442695, %v287_v40 }
 0x3a1   :  { %1856 = vpow2.f32 %v1460_v44 }
 0x3a9   :  { %v1855_v43 = vpop.eup %1854 }
 0x3aa   :  { %297 = vrot.lane.b32.xlu0 %v1855_v43, %s1937_s29 }
 0x3ab   :  { %v1857_v45 = vpop.eup %1856 }
 0x3ac   :  { %v291_v46 = vadd.f32 1.0, %v1857_v45  ;;  %v1470_v45 = vld [vmem:[%s2210_s0 + $0x20] sm:$0xff] }
 0x3ae   :  { %1858 = vrcp.f32 %v291_v46  ;;  %v741_v46 = vadd.f32 %v1470_v45, %v2008_v8 }
 0x3b8   :  { %v1859_v47 = vpop.eup %1858 }
 0x3b9   :  { %v295_v50 = vmul.f32 %v1859_v47, %v125_v23 }
 0x41c   :  { %v298_v48 = vpop.permute.xlu0 %297 }
 0x41d   :  { %v300_v49 = vmul.f32 %v1859_v47, %v298_v48 }
 0x41f   :  { %302 = vrot.lane.b32.xlu1 %v300_v49, %s1938_s1 }
 0x491   :  { %v303_v51 = vpop.permute.xlu1 %302 }
 0x492   :  { %v305_v52 = vadd.f32 %v303_v51, %v295_v50 }
 0x494   :  { %1860 = vtanh.f32 %v305_v52 }
 0x49e   :  { %v1861_v53 = vpop.eup %1860 }
 0x49f   :  { %308 = vrot.lane.b32.xlu0 %v1861_v53, %s1937_s29 }
 0x511   :  { %v309_v54 = vpop.permute.xlu0 %308 }
 0x512   :  { %v311_v55 = vmul.f32 %v1859_v47, %v309_v54 }
 0x514   :  { %313 = vrot.lane.b32.xlu1 %v311_v55, %s1938_s1 }
 0x586   :  { %v314_v56 = vpop.permute.xlu1 %313 }
 0x587   :  { %1608 = vmatmul.mubr.msk.f32.vlgmr.msra.gmra.mrb[2].mxu1 %vm33_vm1, %v314_v56  ;;  %1619 = vmatmul.mubr.msk.f32.vlgmr.msra.gmra.mrb[4].mxu0 %vm33_vm1, %v314_v56 }
 0x588   :  { %1774 = vmatpush3.bf16.msra.mxu1 %v2025_v27  ;;  %1780 = vmatpush3.bf16.msra.mxu0 %v1982_v4 }
 0x589   :  { %1775 = vmatprep.subr.bf16.mxu1 %v1934_v3  ;;  %1781 = vmatprep.subr.bf16.mxu0 %v1934_v3 }
 0x58a   :  { %1629 = vmatprep.mubr.msk.f32.mxu1 %vm1935_vm0, %v1936_v6  ;;  %1640 = vmatprep.mubr.msk.f32.mxu0 %vm1935_vm0, %v1936_v6 }
 0x58c   :  { %1777 = vmatpush3.bf16.msra.mxu1 %v2031_v29  ;;  %1783 = vmatpush3.bf16.msra.mxu0 %v1993_v7 }
 0x58d   :  { %1784 = vmatprep.subr.bf16.mxu1 %v1934_v3  ;;  %1790 = vmatprep.subr.bf16.mxu0 %v1934_v3 }
 0x65a   :  { %v383_v59 = vpop.f32.mrb[2].mxu1  ;;  %v458_v60 = vpop.f32.mrb[4].mxu0 }
 0x65b   :  { %v384_v61 = vadd.f32 %v2059_v36, %v383_v59  ;;  %v462_v62 = vadd.f32 %v458_v60, %v391_v58  ;;  %v1609_v63 = vpop.f32.mrb[3].mxu1  ;;  %v1620_v0 = vpop.f32.mrb[5].mxu0 }
 0x65d   :  { %388 = vst [vmem:[#allocation2 + $0x8] sm:$0xff] %v384_v61  ;;  %1862 = vtanh.f32 %v462_v62  ;;  %v1464_v2 = vmul.f32 -1.442695, %v462_v62 }
 0x65f   :  { %1864 = vpow2.f32 %v1464_v2 }
 0x667   :  { %v1863_v1 = vpop.eup %1862 }
 0x668   :  { %472 = vrot.lane.b32.xlu0 %v1863_v1, %s1937_s29 }
 0x669   :  { %v1865_v5 = vpop.eup %1864 }
 0x66a   :  { %v466_v9 = vadd.f32 1.0, %v1865_v5  ;;  %v1474_v5 = vld [vmem:[%s2210_s0 + $0x28] sm:$0xff] }
 0x66c   :  { %1866 = vrcp.f32 %v466_v9  ;;  %v916_v9 = vadd.f32 %v1474_v5, %v2008_v8 }
 0x676   :  { %v1867_v10 = vpop.eup %1866 }
 0x677   :  { %v470_v13 = vmul.f32 %v1867_v10, %v305_v52 }
 0x6da   :  { %v473_v11 = vpop.permute.xlu0 %472 }
 0x6db   :  { %v475_v12 = vmul.f32 %v1867_v10, %v473_v11 }
 0x6dd   :  { %477 = vrot.lane.b32.xlu1 %v475_v12, %s1938_s1 }
 0x74f   :  { %v478_v14 = vpop.permute.xlu1 %477 }
 0x750   :  { %v480_v15 = vadd.f32 %v478_v14, %v470_v13 }
 0x752   :  { %1868 = vtanh.f32 %v480_v15 }
 0x75c   :  { %v1869_v16 = vpop.eup %1868 }
 0x75d   :  { %483 = vrot.lane.b32.xlu0 %v1869_v16, %s1937_s29 }
 0x7cf   :  { %v484_v17 = vpop.permute.xlu0 %483 }
 0x7d0   :  { %v486_v18 = vmul.f32 %v1867_v10, %v484_v17 }
 0x7d2   :  { %488 = vrot.lane.b32.xlu1 %v486_v18, %s1938_s1 }
 0x844   :  { %v489_v19 = vpop.permute.xlu1 %488 }
 0x845   :  { %1630 = vmatmul.mubr.msk.f32.vlgmr.msra.gmra.mrb[4].mxu1 %vm33_vm1, %v489_v19  ;;  %1641 = vmatmul.mubr.msk.f32.vlgmr.msra.gmra.mrb[6].mxu0 %vm33_vm1, %v489_v19 }
 0x846   :  { %1786 = vmatpush3.bf16.msra.mxu1 %v2025_v27  ;;  %1792 = vmatpush3.bf16.msra.mxu0 %v1982_v4 }
 0x847   :  { %1787 = vmatprep.subr.bf16.mxu1 %v1934_v3  ;;  %1793 = vmatprep.subr.bf16.mxu0 %v1934_v3 }
 0x848   :  { %1651 = vmatprep.mubr.msk.f32.mxu1 %vm1935_vm0, %v1936_v6  ;;  %1662 = vmatprep.mubr.msk.f32.mxu0 %vm1935_vm0, %v1936_v6 }
 0x84a   :  { %1789 = vmatpush3.bf16.msra.mxu1 %v2031_v29  ;;  %1795 = vmatpush3.bf16.msra.mxu0 %v1993_v7 }
 0x84b   :  { %1796 = vmatprep.subr.bf16.mxu1 %v1934_v3  ;;  %1802 = vmatprep.subr.bf16.mxu0 %v1934_v3 }
 0x918   :  { %v558_v22 = vpop.f32.mrb[4].mxu1  ;;  %v633_v23 = vpop.f32.mrb[6].mxu0 }
 0x919   :  { %v559_v24 = vadd.f32 %v2059_v36, %v558_v22  ;;  %v637_v25 = vadd.f32 %v633_v23, %v566_v21  ;;  %v1631_v26 = vpop.f32.mrb[5].mxu1  ;;  %v1642_v28 = vpop.f32.mrb[7].mxu0 }
 0x91b   :  { %563 = vst [vmem:[#allocation2 + $0x10] sm:$0xff] %v559_v24  ;;  %1870 = vtanh.f32 %v637_v25  ;;  %v1468_v31 = vmul.f32 -1.442695, %v637_v25 }
 0x91d   :  { %1872 = vpow2.f32 %v1468_v31 }
 0x925   :  { %v1871_v30 = vpop.eup %1870 }
 0x926   :  { %647 = vrot.lane.b32.xlu0 %v1871_v30, %s1937_s29 }
 0x927   :  { %v1873_v32 = vpop.eup %1872 }
 0x928   :  { %v641_v33 = vadd.f32 1.0, %v1873_v32 }
 0x92a   :  { %1874 = vrcp.f32 %v641_v33 }
 0x934   :  { %v1875_v34 = vpop.eup %1874 }
 0x935   :  { %v645_v38 = vmul.f32 %v1875_v34, %v480_v15 }
 0x998   :  { %v648_v35 = vpop.permute.xlu0 %647 }
 0x999   :  { %v650_v37 = vmul.f32 %v1875_v34, %v648_v35 }
 0x99b   :  { %652 = vrot.lane.b32.xlu1 %v650_v37, %s1938_s1 }
 0xa0d   :  { %v653_v39 = vpop.permute.xlu1 %652 }
 0xa0e   :  { %v655_v40 = vadd.f32 %v653_v39, %v645_v38 }
 0xa10   :  { %1876 = vtanh.f32 %v655_v40 }
 0xa1a   :  { %v1877_v41 = vpop.eup %1876 }
 0xa1b   :  { %658 = vrot.lane.b32.xlu0 %v1877_v41, %s1937_s29 }
 0xa8d   :  { %v659_v42 = vpop.permute.xlu0 %658 }
 0xa8e   :  { %v661_v43 = vmul.f32 %v1875_v34, %v659_v42 }
 0xa90   :  { %663 = vrot.lane.b32.xlu1 %v661_v43, %s1938_s1 }
 0xb02   :  { %v664_v44 = vpop.permute.xlu1 %663 }
 0xb03   :  { %1652 = vmatmul.mubr.msk.f32.vlgmr.msra.gmra.mrb[6].mxu1 %vm33_vm1, %v664_v44  ;;  %1663 = vmatmul.mubr.msk.f32.vlgmr.msra.gmra.mrb[8].mxu0 %vm33_vm1, %v664_v44 }
 0xb04   :  { %1798 = vmatpush3.bf16.msra.mxu1 %v2025_v27  ;;  %1804 = vmatpush3.bf16.msra.mxu0 %v1982_v4 }
 0xb05   :  { %1799 = vmatprep.subr.bf16.mxu1 %v1934_v3  ;;  %1805 = vmatprep.subr.bf16.mxu0 %v1934_v3 }
 0xb06   :  { %1673 = vmatprep.mubr.msk.f32.mxu1 %vm1935_vm0, %v1936_v6  ;;  %1684 = vmatprep.mubr.msk.f32.mxu0 %vm1935_vm0, %v1936_v6 }
 0xb08   :  { %1801 = vmatpush3.bf16.msra.mxu1 %v2031_v29  ;;  %1807 = vmatpush3.bf16.msra.mxu0 %v1993_v7 }
 0xb09   :  { %1808 = vmatprep.subr.bf16.mxu1 %v1934_v3  ;;  %1814 = vmatprep.subr.bf16.mxu0 %v1934_v3 }
 0xbd6   :  { %v733_v47 = vpop.f32.mrb[6].mxu1  ;;  %v808_v48 = vpop.f32.mrb[8].mxu0 }
 0xbd7   :  { %v734_v49 = vadd.f32 %v2059_v36, %v733_v47  ;;  %v812_v50 = vadd.f32 %v808_v48, %v741_v46  ;;  %v1653_v51 = vpop.f32.mrb[7].mxu1  ;;  %v1664_v52 = vpop.f32.mrb[9].mxu0 }
 0xbd9   :  { %738 = vst [vmem:[#allocation2 + $0x18] sm:$0xff] %v734_v49  ;;  %1878 = vtanh.f32 %v812_v50  ;;  %v1472_v54 = vmul.f32 -1.442695, %v812_v50 }
 0xbdb   :  { %1880 = vpow2.f32 %v1472_v54 }
 0xbe3   :  { %v1879_v53 = vpop.eup %1878 }
 0xbe4   :  { %822 = vrot.lane.b32.xlu0 %v1879_v53, %s1937_s29  ;;  %v1482_v53 = vld [vmem:[%s2210_s0 + $0x38] sm:$0xff] }
 0xbe5   :  { %v1881_v55 = vpop.eup %1880  ;;  %v1266_v54 = vadd.f32 %v1482_v53, %v2008_v8 }
 0xbe6   :  { %v816_v56 = vadd.f32 1.0, %v1881_v55 }
 0xbe8   :  { %1882 = vrcp.f32 %v816_v56 }
 0xbf2   :  { %v1883_v57 = vpop.eup %1882 }
 0xbf3   :  { %v820_v60 = vmul.f32 %v1883_v57, %v655_v40 }
 0xc56   :  { %v823_v58 = vpop.permute.xlu0 %822 }
 0xc57   :  { %v825_v59 = vmul.f32 %v1883_v57, %v823_v58 }
 0xc59   :  { %827 = vrot.lane.b32.xlu1 %v825_v59, %s1938_s1 }
 0xccb   :  { %v828_v61 = vpop.permute.xlu1 %827 }
 0xccc   :  { %v830_v62 = vadd.f32 %v828_v61, %v820_v60 }
 0xcce   :  { %1884 = vtanh.f32 %v830_v62 }
 0xcd8   :  { %v1885_v63 = vpop.eup %1884 }
 0xcd9   :  { %833 = vrot.lane.b32.xlu0 %v1885_v63, %s1937_s29 }
 0xd4b   :  { %v834_v0 = vpop.permute.xlu0 %833 }
 0xd4c   :  { %v836_v1 = vmul.f32 %v1883_v57, %v834_v0 }
 0xd4e   :  { %838 = vrot.lane.b32.xlu1 %v836_v1, %s1938_s1 }
 0xdc0   :  { %v839_v2 = vpop.permute.xlu1 %838 }
 0xdc1   :  { %1674 = vmatmul.mubr.msk.f32.vlgmr.msra.gmra.mrb[8].mxu1 %vm33_vm1, %v839_v2  ;;  %1685 = vmatmul.mubr.msk.f32.vlgmr.msra.gmra.mrb[10].mxu0 %vm33_vm1, %v839_v2 }
 0xdc2   :  { %1810 = vmatpush3.bf16.msra.mxu1 %v2025_v27  ;;  %1816 = vmatpush3.bf16.msra.mxu0 %v1982_v4 }
 0xdc3   :  { %1811 = vmatprep.subr.bf16.mxu1 %v1934_v3  ;;  %1817 = vmatprep.subr.bf16.mxu0 %v1934_v3 }
 0xdc4   :  { %1695 = vmatprep.mubr.msk.f32.mxu1 %vm1935_vm0, %v1936_v6  ;;  %1706 = vmatprep.mubr.msk.f32.mxu0 %vm1935_vm0, %v1936_v6 }
 0xdc6   :  { %1813 = vmatpush3.bf16.msra.mxu1 %v2031_v29  ;;  %1819 = vmatpush3.bf16.msra.mxu0 %v1993_v7 }
 0xdc7   :  { %1820 = vmatprep.subr.bf16.mxu1 %v1934_v3  ;;  %1826 = vmatprep.subr.bf16.mxu0 %v1934_v3 }
 0xe94   :  { %v908_v10 = vpop.f32.mrb[8].mxu1  ;;  %v983_v11 = vpop.f32.mrb[10].mxu0 }
 0xe95   :  { %v909_v12 = vadd.f32 %v2059_v36, %v908_v10  ;;  %v987_v13 = vadd.f32 %v983_v11, %v916_v9  ;;  %v1675_v14 = vpop.f32.mrb[9].mxu1  ;;  %v1686_v15 = vpop.f32.mrb[11].mxu0 }
 0xe97   :  { %913 = vst [vmem:[#allocation2 + $0x20] sm:$0xff] %v909_v12  ;;  %1886 = vtanh.f32 %v987_v13  ;;  %v1476_v17 = vmul.f32 -1.442695, %v987_v13 }
 0xe99   :  { %1888 = vpow2.f32 %v1476_v17 }
 0xea1   :  { %v1887_v16 = vpop.eup %1886 }
 0xea2   :  { %997 = vrot.lane.b32.xlu0 %v1887_v16, %s1937_s29 }
 0xea3   :  { %v1889_v18 = vpop.eup %1888 }
 0xea4   :  { %v991_v19 = vadd.f32 1.0, %v1889_v18 }
 0xea6   :  { %1890 = vrcp.f32 %v991_v19 }
 0xeb0   :  { %v1891_v20 = vpop.eup %1890 }
 0xeb1   :  { %v995_v23 = vmul.f32 %v1891_v20, %v830_v62 }
 0xf14   :  { %v998_v21 = vpop.permute.xlu0 %997 }
 0xf15   :  { %v1000_v22 = vmul.f32 %v1891_v20, %v998_v21 }
 0xf17   :  { %1002 = vrot.lane.b32.xlu1 %v1000_v22, %s1938_s1 }
 0xf89   :  { %v1003_v24 = vpop.permute.xlu1 %1002 }
 0xf8a   :  { %v1005_v25 = vadd.f32 %v1003_v24, %v995_v23 }
 0xf8c   :  { %1892 = vtanh.f32 %v1005_v25 }
 0xf96   :  { %v1893_v26 = vpop.eup %1892 }
 0xf97   :  { %1008 = vrot.lane.b32.xlu0 %v1893_v26, %s1937_s29 }
0x1009   :  { %v1009_v28 = vpop.permute.xlu0 %1008 }
0x100a   :  { %v1011_v30 = vmul.f32 %v1891_v20, %v1009_v28 }
0x100c   :  { %1013 = vrot.lane.b32.xlu1 %v1011_v30, %s1938_s1 }
0x107e   :  { %v1014_v31 = vpop.permute.xlu1 %1013 }
0x107f   :  { %1696 = vmatmul.mubr.msk.f32.vlgmr.msra.gmra.mrb[10].mxu1 %vm33_vm1, %v1014_v31  ;;  %1707 = vmatmul.mubr.msk.f32.vlgmr.msra.gmra.mrb[12].mxu0 %vm33_vm1, %v1014_v31 }
0x1080   :  { %1822 = vmatpush3.bf16.msra.mxu1 %v2025_v27  ;;  %1828 = vmatpush3.bf16.msra.mxu0 %v1982_v4  ;;  %v1478_v4 = vld [vmem:[%s2210_s0 + $0x30] sm:$0xff]  ;;  %s1939_s0 = smov [#allocation2]  }
0x1081   :  { %1823 = vmatprep.subr.bf16.mxu1 %v1934_v3  ;;  %1829 = vmatprep.subr.bf16.mxu0 %v1934_v3  ;;  %v1091_v32 = vadd.f32 %v1478_v4, %v2008_v8  ;;  %s1444_s26 = sshll.u32 %s1939_s0, 4  ;;  %s1445_s26 = int_to_ptr.vmem [resolvable:$true] %s1444_s26 }
0x1082   :  { %1717 = vmatprep.mubr.msk.f32.mxu1 %vm1935_vm0, %v1936_v6  ;;  %1728 = vmatprep.mubr.msk.f32.mxu0 %vm1935_vm0, %v1936_v6  ;;  %s1910_s27 = scalar_lea.vmem %s1445_s26, 1024  ;;  %p1915_p1 = scmp.lt.s32.totalorder %s1445_s26, %s1445_s26 }
0x1083   :  { %p1911_p0 = scmp.ne.s32.totalorder %s1445_s26, %s1910_s27  ;;  %p1916_p2 = scmp.lt.s32.totalorder %s1910_s27, %s1910_s27 }
0x1084   :  { %1825 = vmatpush3.bf16.msra.mxu1 %v2031_v29  ;;  %1831 = vmatpush3.bf16.msra.mxu0 %v1993_v7 }
0x1085   :  { %1832 = vmatprep.subr.bf16.mxu1 %v1934_v3  ;;  %p1917_p3 = por %p1916_p2, %p1915_p1 }
0x1087   :  { %p1918_p4 = pnand %p1917_p3, %p1911_p0 }
0x1152   :  { %v1083_v33 = vpop.f32.mrb[10].mxu1  ;;  %v1158_v34 = vpop.f32.mrb[12].mxu0 }
0x1153   :  { %v1084_v35 = vadd.f32 %v2059_v36, %v1083_v33  ;;  %v1162_v37 = vadd.f32 %v1158_v34, %v1091_v32  ;;  %v1697_v38 = vpop.f32.mrb[11].mxu1  ;;  %v1708_v39 = vpop.f32.mrb[13].mxu0 }
0x1155   :  { %1088 = vst [vmem:[#allocation2 + $0x28] sm:$0xff] %v1084_v35  ;;  %1894 = vtanh.f32 %v1162_v37  ;;  %v1480_v7 = vmul.f32 -1.442695, %v1162_v37 }
0x1157   :  { %1896 = vpow2.f32 %v1480_v7 }
0x115f   :  { %v1895_v40 = vpop.eup %1894 }
0x1160   :  { %1172 = vrot.lane.b32.xlu0 %v1895_v40, %s1937_s29 }
0x1161   :  { %v1897_v41 = vpop.eup %1896 }
0x1162   :  { %v1166_v42 = vadd.f32 1.0, %v1897_v41 }
0x1164   :  { %1898 = vrcp.f32 %v1166_v42 }
0x116e   :  { %v1899_v43 = vpop.eup %1898 }
0x116f   :  { %v1170_v46 = vmul.f32 %v1899_v43, %v1005_v25 }
0x11d2   :  { %v1173_v44 = vpop.permute.xlu0 %1172 }
0x11d3   :  { %v1175_v45 = vmul.f32 %v1899_v43, %v1173_v44 }
0x11d5   :  { %1177 = vrot.lane.b32.xlu1 %v1175_v45, %s1938_s1 }
0x1247   :  { %v1178_v47 = vpop.permute.xlu1 %1177 }
0x1248   :  { %v1180_v48 = vadd.f32 %v1178_v47, %v1170_v46 }
0x124a   :  { %1900 = vtanh.f32 %v1180_v48 }
0x1254   :  { %v1901_v49 = vpop.eup %1900 }
0x1255   :  { %1183 = vrot.lane.b32.xlu0 %v1901_v49, %s1937_s29 }
0x12c7   :  { %v1184_v50 = vpop.permute.xlu0 %1183 }
0x12c8   :  { %v1186_v51 = vmul.f32 %v1899_v43, %v1184_v50 }
0x12ca   :  { %1188 = vrot.lane.b32.xlu1 %v1186_v51, %s1938_s1 }
0x133c   :  { %v1189_v52 = vpop.permute.xlu1 %1188 }
0x133d   :  { %1718 = vmatmul.mubr.msk.f32.vlgmr.msra.gmra.mrb[12].mxu1 %vm33_vm1, %v1189_v52  ;;  %1729 = vmatmul.mubr.msk.f32.vlgmr.msra.gmra.mrb[14].mxu0 %vm33_vm1, %v1189_v52 }
0x133e   :  { %1834 = vmatpush3.bf16.msra.mxu1 %v2025_v27  ;;  %1739 = vmatprep.mubr.msk.f32.mxu1 %vm1935_vm0, %v1936_v6 }
0x133f   :  { %1835 = vmatprep.subr.bf16.mxu1 %v1934_v3 }
0x1342   :  { %1837 = vmatpush3.bf16.msra.mxu1 %v2031_v29 }
0x1410   :  { %v1258_v55 = vpop.f32.mrb[12].mxu1  ;;  %v1333_v56 = vpop.f32.mrb[14].mxu0 }
0x1411   :  { %v1259_v57 = vadd.f32 %v2059_v36, %v1258_v55  ;;  %v1337_v58 = vadd.f32 %v1333_v56, %v1266_v54  ;;  %v1719_v59 = vpop.f32.mrb[13].mxu1  ;;  %v1730_v27 = vpop.f32.mrb[15].mxu0 }
0x1413   :  { %1263 = vst [vmem:[#allocation2 + $0x30] sm:$0xff] %v1259_v57  ;;  %1902 = vtanh.f32 %v1337_v58  ;;  %v1484_v3 = vmul.f32 -1.442695, %v1337_v58 }
0x1415   :  { %1904 = vpow2.f32 %v1484_v3 }
0x141d   :  { %v1903_v6 = vpop.eup %1902 }
0x141e   :  { %1347 = vrot.lane.b32.xlu0 %v1903_v6, %s1937_s29 }
0x141f   :  { %v1905_v29 = vpop.eup %1904 }
0x1420   :  { %v1341_v60 = vadd.f32 1.0, %v1905_v29 }
0x1422   :  { %1906 = vrcp.f32 %v1341_v60 }
0x142c   :  { %v1907_v61 = vpop.eup %1906 }
0x142d   :  { %v1345_v63 = vmul.f32 %v1907_v61, %v1180_v48 }
0x1490   :  { %v1348_v62 = vpop.permute.xlu0 %1347 }
0x1491   :  { %v1350_v8 = vmul.f32 %v1907_v61, %v1348_v62 }
0x1493   :  { %1352 = vrot.lane.b32.xlu1 %v1350_v8, %s1938_s1 }
0x1505   :  { %v1353_v0 = vpop.permute.xlu1 %1352 }
0x1506   :  { %v1355_v1 = vadd.f32 %v1353_v0, %v1345_v63 }
0x1508   :  { %1908 = vtanh.f32 %v1355_v1 }
0x1512   :  { %v1909_v2 = vpop.eup %1908 }
0x1513   :  { %1358 = vrot.lane.b32.xlu0 %v1909_v2, %s1937_s29 }
0x1585   :  { %v1359_v5 = vpop.permute.xlu0 %1358 }
0x1586   :  { %v1361_v9 = vmul.f32 %v1907_v61, %v1359_v5 }
0x1588   :  { %1363 = vrot.lane.b32.xlu1 %v1361_v9, %s1938_s1 }
0x15fa   :  { %v1364_v10 = vpop.permute.xlu1 %1363 }
0x15fb   :  { %1740 = vmatmul.mubr.msk.f32.vlgmr.msra.gmra.mrb[14].mxu1 %vm33_vm1, %v1364_v10 }
0x16ce   :  { %v1433_v11 = vpop.f32.mrb[14].mxu1 }
0x16cf   :  { %v1434_v12 = vadd.f32 %v2059_v36, %v1433_v11  ;;  %v1741_v13 = vpop.f32.mrb[15].mxu1 }
0x16d1   :  { %1438 = vst [vmem:[#allocation2 + $0x38] sm:$0xff] %v1434_v12 }
0x16d2   :  { %1921 = shalt.err (!%p1918_p4)
}
0x16d3   :  { %s1922_s1 = scalar_lea.hbm %s2215_s5, 1024 }
0x16d4   :  { %p1923_p5 = scmp.ne.s32.totalorder %s2215_s5, %s1922_s1  ;;  %p1926_p6 = scmp.lt.u32.totalorder %s1922_s1, %s2215_s5 }
0x16d6   :  { %p1928_p7 = pnand %p1926_p6, %p1923_p5 }
0x16d8   :  { %1931 = shalt.err (!%p1928_p7)
}
0x16d9   :  { %s1940_s9 = smov 128   ;;  %s1941_s10 = smov 8  }
0x16da   :  { %1450 = dma.vmem_to_hbm [thread:$0]  %s1445_s26, 1024, %s2215_s5, [#allocation3], %s1940_s9, %s1940_s9, %s1941_s10  }
0x16db   :  { %1932 = dma.done.wait [#allocation3], 1024  }
0x16dc   :  { %1933 = vsyncadd [#allocation3], 4294966272 }
0x16dd   :  { %1454 = vsyncpa [#allocation3], 1 }

</bundles_post_ra>
